<compile_context>
chip_gen: v7x
topology: tpu7x:2x2x1
jax: 0.10.0
libtpu: 0.0.40
codegen_flags: <defaults>
</compile_context>

<pallas_src>
import jax
import jax.numpy as jnp
from jax.experimental import pallas as pl
from jax.experimental.pallas import tpu as pltpu


def internal_rescaling(x, w1, b1, w2, b2, wa1, ba1, wa2, ba2):
    """Forward of InternalRescalingModule.

    x   : (N, C, H, W) float32
    w1  : (C, C, 3, 3), b1: (C,)       conv1
    w2  : (C, C, 3, 3), b2: (C,)       conv2
    wa1 : (C//8, C),    ba1: (C//8,)   attention squeeze 1x1 conv
    wa2 : (C, C//8),    ba2: (C,)      attention excite 1x1 conv
    """
    N, C, H, W = x.shape
    HW = H * W
    Ch8 = wa1.shape[0]
    assert wa1.shape == (Ch8, C) and wa2.shape == (C, Ch8)

    # ---- glue: free reshape (no data movement), tiny weight re-layouts ----
    x_flat = x.reshape(N, C, HW)

    # 3x3 taps: tap t = ky*3 + kx pairs with spatial offset (dy, dx) = (ky-1, kx-1)
    w1_taps = jnp.transpose(w1, (2, 3, 0, 1)).reshape(9, C, C)
    w2_taps = jnp.transpose(w2, (2, 3, 0, 1)).reshape(9, C, C)
    b1_col = b1.reshape(C, 1)
    b2_col = b2.reshape(C, 1)

    wa1_t = jnp.transpose(wa1)          # (C, C//8)
    ba1_row = ba1.reshape(1, Ch8)
    ba2_col = ba2.reshape(C, 1)

    # Border-validity masks for each of the 9 taps on the flattened H*W axis
    # (precomputed here so the kernel needs no integer div/mod).
    hh, ww = jnp.meshgrid(jnp.arange(H), jnp.arange(W), indexing="ij")
    mask_list = []
    for t in range(9):
        dy, dx = t // 3 - 1, t % 3 - 1
        valid = ((hh + dy >= 0) & (hh + dy < H) &
                 (ww + dx >= 0) & (ww + dx < W))
        mask_list.append(valid.reshape(1, HW))
    masks = jnp.stack(mask_list).astype(jnp.float32)       # (9, 1, HW)

    def kernel(x_ref, m_ref, w1_ref, b1_ref, w2_ref, b2_ref,
               wa1_ref, ba1_ref, wa2_ref, ba2_ref, o_ref):
        xin = x_ref[0]                                      # (C, HW) f32

        def conv3x3_relu(inp, w_ref, b_ref):
            acc = jnp.zeros((C, HW), jnp.float32)
            for t in range(9):
                dy, dx = t // 3 - 1, t % 3 - 1
                s = dy * W + dx                             # flat spatial offset
                if s == 0:
                    shifted = inp
                else:
                    # shifted[:, i] = inp[:, i + s] (cyclic; wraps masked below)
                    shifted = pltpu.roll(inp, shift=(-s) % HW, axis=1)
                if not (dy == 0 and dx == 0):
                    shifted = shifted * m_ref[t]            # zero out-of-image taps
                acc = acc + jnp.dot(w_ref[t], shifted,
                                    preferred_element_type=jnp.float32)
            return jnp.maximum(acc + b_ref[...], 0.0)

        x1 = conv3x3_relu(xin, w1_ref, b1_ref)
        x2 = conv3x3_relu(x1, w2_ref, b2_ref)

        # Squeeze-excite attention: VPU multiplies + XLU reductions only.
        pooled = jnp.sum(x2, axis=1, keepdims=True) * (1.0 / HW)         # (C, 1)
        hidden = jnp.sum(wa1_ref[...] * pooled, axis=0, keepdims=True)   # (1, C//8)
        hidden = jnp.maximum(hidden + ba1_ref[...], 0.0)
        z = jnp.sum(wa2_ref[...] * hidden, axis=1, keepdims=True) + ba2_ref[...]
        attn = 1.0 / (1.0 + jnp.exp(-z))                                 # (C, 1)

        # Gated residual, lane-dense store over the full (C, HW) tile.
        o_ref[0] = (xin + x2 * attn).astype(o_ref.dtype)

    zero2 = lambda n: (0, 0)
    zero3 = lambda n: (0, 0, 0)

    out_flat = pl.pallas_call(
        kernel,
        out_shape=jax.ShapeDtypeStruct((N, C, HW), x.dtype),
        grid_spec=pltpu.PrefetchScalarGridSpec(
            num_scalar_prefetch=0,
            grid=(N,),
            in_specs=[
                pl.BlockSpec((1, C, HW), lambda n: (n, 0, 0)),  # x (identity + conv input)
                pl.BlockSpec((9, 1, HW), zero3),                # tap border masks
                pl.BlockSpec((9, C, C), zero3),                 # conv1 taps
                pl.BlockSpec((C, 1), zero2),                    # conv1 bias
                pl.BlockSpec((9, C, C), zero3),                 # conv2 taps
                pl.BlockSpec((C, 1), zero2),                    # conv2 bias
                pl.BlockSpec((C, Ch8), zero2),                  # attention W1^T
                pl.BlockSpec((1, Ch8), zero2),                  # attention b1
                pl.BlockSpec((C, Ch8), zero2),                  # attention W2
                pl.BlockSpec((C, 1), zero2),                    # attention b2
            ],
            out_specs=pl.BlockSpec((1, C, HW), lambda n: (n, 0, 0)),
        ),
        compiler_params=pltpu.CompilerParams(
            dimension_semantics=("parallel",),
            vmem_limit_bytes=32 * 1024 * 1024,
        ),
    )(x_flat, masks, w1_taps, b1_col, w2_taps, b2_col,
      wa1_t, ba1_row, wa2, ba2_col)

    return out_flat.reshape(N, C, H, W)


def _reference(x, w1, b1, w2, b2, wa1, ba1, wa2, ba2):
    """Plain-JAX reference reproducing the PyTorch forward (NCHW)."""
    dn = ("NCHW", "OIHW", "NCHW")
    hi = jax.lax.Precision.HIGHEST
    y = jax.lax.conv_general_dilated(x, w1, (1, 1), "SAME",
                                     dimension_numbers=dn, precision=hi)
    y = jnp.maximum(y + b1[None, :, None, None], 0.0)
    y = jax.lax.conv_general_dilated(y, w2, (1, 1), "SAME",
                                     dimension_numbers=dn, precision=hi)
    y = jnp.maximum(y + b2[None, :, None, None], 0.0)
    pooled = jnp.mean(y, axis=(2, 3), keepdims=True)                       # (N,C,1,1)
    h = jnp.einsum("oc,nchw->nohw", wa1, pooled, precision=hi) + ba1[None, :, None, None]
    h = jnp.maximum(h, 0.0)
    a = jnp.einsum("oc,nchw->nohw", wa2, h, precision=hi) + ba2[None, :, None, None]
    a = jax.nn.sigmoid(a)                                                  # (N,C,1,1)
    return x + y * a


if __name__ == "__main__":
    key = jax.random.PRNGKey(0)
    # C=16 so in_channels // 8 >= 1, as the module's attention branch requires.
    N, C, H, W = 2, 16, 16, 16
    Ch8 = C // 8

    ks = jax.random.split(key, 9)
    x = jax.random.normal(ks[0], (N, C, H, W), dtype=jnp.float32)
    w1 = jax.random.normal(ks[1], (C, C, 3, 3), dtype=jnp.float32) * 0.1
    b1 = jax.random.normal(ks[2], (C,), dtype=jnp.float32) * 0.1
    w2 = jax.random.normal(ks[3], (C, C, 3, 3), dtype=jnp.float32) * 0.1
    b2 = jax.random.normal(ks[4], (C,), dtype=jnp.float32) * 0.1
    wa1 = jax.random.normal(ks[5], (Ch8, C), dtype=jnp.float32) * 0.1
    ba1 = jax.random.normal(ks[6], (Ch8,), dtype=jnp.float32) * 0.1
    wa2 = jax.random.normal(ks[7], (C, Ch8), dtype=jnp.float32) * 0.1
    ba2 = jax.random.normal(ks[8], (C,), dtype=jnp.float32) * 0.1

    out = internal_rescaling(x, w1, b1, w2, b2, wa1, ba1, wa2, ba2)
    out = jax.block_until_ready(out)

    ref = _reference(x, w1, b1, w2, b2, wa1, ba1, wa2, ba2)
    assert out.shape == (N, C, H, W)
    max_err = float(jnp.max(jnp.abs(out - ref)))
    assert jnp.allclose(out, ref, atol=1e-2, rtol=1e-2), f"mismatch vs reference, max_abs_err={max_err}"

    print("KERNEL_OK")
</pallas_src>

<mosaic_0001>
module attributes {stable_mosaic.version = 11 : i64} {
  func.func @kernel(%arg0: i32, %arg1: memref<1x16x256xf32, #tpu.memory_space<vmem>>, %arg2: memref<9x1x256xf32, #tpu.memory_space<vmem>>, %arg3: memref<9x16x16xf32, #tpu.memory_space<vmem>>, %arg4: memref<16x1xf32, #tpu.memory_space<vmem>>, %arg5: memref<9x16x16xf32, #tpu.memory_space<vmem>>, %arg6: memref<16x1xf32, #tpu.memory_space<vmem>>, %arg7: memref<16x2xf32, #tpu.memory_space<vmem>>, %arg8: memref<1x2xf32, #tpu.memory_space<vmem>>, %arg9: memref<16x2xf32, #tpu.memory_space<vmem>>, %arg10: memref<16x1xf32, #tpu.memory_space<vmem>>, %arg11: memref<1x16x256xf32, #tpu.memory_space<vmem>>) attributes {dimension_semantics = [#tpu.dimension_semantics<parallel>], iteration_bounds = array<i64: 2>, scalar_prefetch = 0 : i64, scratch_operands = 0 : i64, tpu.core_type = #tpu.core_type<tc>, window_params = [{transform_indices = @transform_0, window_bounds = array<i64: 1, 16, 256>}, {pipeline_mode = #tpu.pipeline_mode<synchronous>, transform_indices = @transform_1, window_bounds = array<i64: 9, 1, 256>}, {pipeline_mode = #tpu.pipeline_mode<synchronous>, transform_indices = @transform_2, window_bounds = array<i64: 9, 16, 16>}, {pipeline_mode = #tpu.pipeline_mode<synchronous>, transform_indices = @transform_3, window_bounds = array<i64: 16, 1>}, {pipeline_mode = #tpu.pipeline_mode<synchronous>, transform_indices = @transform_4, window_bounds = array<i64: 9, 16, 16>}, {pipeline_mode = #tpu.pipeline_mode<synchronous>, transform_indices = @transform_5, window_bounds = array<i64: 16, 1>}, {pipeline_mode = #tpu.pipeline_mode<synchronous>, transform_indices = @transform_6, window_bounds = array<i64: 16, 2>}, {pipeline_mode = #tpu.pipeline_mode<synchronous>, transform_indices = @transform_7, window_bounds = array<i64: 1, 2>}, {pipeline_mode = #tpu.pipeline_mode<synchronous>, transform_indices = @transform_8, window_bounds = array<i64: 16, 2>}, {pipeline_mode = #tpu.pipeline_mode<synchronous>, transform_indices = @transform_9, window_bounds = array<i64: 16, 1>}, {transform_indices = @transform_10, window_bounds = array<i64: 1, 16, 256>}]} {
    %c0 = arith.constant 0 : index
    %c0_0 = arith.constant 0 : index
    %c0_1 = arith.constant 0 : index
    %0 = vector.load %arg1[%c0, %c0_0, %c0_1] : memref<1x16x256xf32, #tpu.memory_space<vmem>>, vector<1x16x256xf32>
    %1 = vector.shape_cast %0 : vector<1x16x256xf32> to vector<16x256xf32>
    %cst = arith.constant 0.000000e+00 : f32
    %2 = vector.broadcast %cst : f32 to vector<16x256xf32>
    %c17_i32 = arith.constant 17 : i32
    %3 = tpu.dynamic_rotate %1 by %c17_i32 dim 1 : vector<16x256xf32>, i32 -> vector<16x256xf32>
    %c0_2 = arith.constant 0 : index
    %c0_3 = arith.constant 0 : index
    %c0_4 = arith.constant 0 : index
    %4 = vector.load %arg2[%c0_2, %c0_3, %c0_4] : memref<9x1x256xf32, #tpu.memory_space<vmem>>, vector<1x1x256xf32>
    %5 = vector.shape_cast %4 : vector<1x1x256xf32> to vector<1x256xf32>
    %6 = vector.broadcast %5 : vector<1x256xf32> to vector<16x256xf32>
    %7 = arith.mulf %3, %6 : vector<16x256xf32>
    %c0_5 = arith.constant 0 : index
    %c0_6 = arith.constant 0 : index
    %c0_7 = arith.constant 0 : index
    %8 = vector.load %arg3[%c0_5, %c0_6, %c0_7] : memref<9x16x16xf32, #tpu.memory_space<vmem>>, vector<1x16x16xf32>
    %9 = vector.shape_cast %8 : vector<1x16x16xf32> to vector<16x16xf32>
    %cst_8 = arith.constant dense<0.000000e+00> : vector<16x256xf32>
    %10 = tpu.matmul %9, %7, %cst_8 {dimension_numbers = #tpu.dot_dimension_numbers<[1], [0], [0], [1], [0, 0, 1, 1], [], []>} : vector<16x16xf32>, vector<16x256xf32>, vector<16x256xf32> -> vector<16x256xf32>
    %11 = arith.addf %2, %10 : vector<16x256xf32>
    %c16_i32 = arith.constant 16 : i32
    %12 = tpu.dynamic_rotate %1 by %c16_i32 dim 1 : vector<16x256xf32>, i32 -> vector<16x256xf32>
    %c1 = arith.constant 1 : index
    %c0_9 = arith.constant 0 : index
    %c0_10 = arith.constant 0 : index
    %13 = vector.load %arg2[%c1, %c0_9, %c0_10] : memref<9x1x256xf32, #tpu.memory_space<vmem>>, vector<1x1x256xf32>
    %14 = vector.shape_cast %13 : vector<1x1x256xf32> to vector<1x256xf32>
    %15 = vector.broadcast %14 : vector<1x256xf32> to vector<16x256xf32>
    %16 = arith.mulf %12, %15 : vector<16x256xf32>
    %c1_11 = arith.constant 1 : index
    %c0_12 = arith.constant 0 : index
    %c0_13 = arith.constant 0 : index
    %17 = vector.load %arg3[%c1_11, %c0_12, %c0_13] : memref<9x16x16xf32, #tpu.memory_space<vmem>>, vector<1x16x16xf32>
    %18 = vector.shape_cast %17 : vector<1x16x16xf32> to vector<16x16xf32>
    %cst_14 = arith.constant dense<0.000000e+00> : vector<16x256xf32>
    %19 = tpu.matmul %18, %16, %cst_14 {dimension_numbers = #tpu.dot_dimension_numbers<[1], [0], [0], [1], [0, 0, 1, 1], [], []>} : vector<16x16xf32>, vector<16x256xf32>, vector<16x256xf32> -> vector<16x256xf32>
    %20 = arith.addf %11, %19 : vector<16x256xf32>
    %c15_i32 = arith.constant 15 : i32
    %21 = tpu.dynamic_rotate %1 by %c15_i32 dim 1 : vector<16x256xf32>, i32 -> vector<16x256xf32>
    %c2 = arith.constant 2 : index
    %c0_15 = arith.constant 0 : index
    %c0_16 = arith.constant 0 : index
    %22 = vector.load %arg2[%c2, %c0_15, %c0_16] : memref<9x1x256xf32, #tpu.memory_space<vmem>>, vector<1x1x256xf32>
    %23 = vector.shape_cast %22 : vector<1x1x256xf32> to vector<1x256xf32>
    %24 = vector.broadcast %23 : vector<1x256xf32> to vector<16x256xf32>
    %25 = arith.mulf %21, %24 : vector<16x256xf32>
    %c2_17 = arith.constant 2 : index
    %c0_18 = arith.constant 0 : index
    %c0_19 = arith.constant 0 : index
    %26 = vector.load %arg3[%c2_17, %c0_18, %c0_19] : memref<9x16x16xf32, #tpu.memory_space<vmem>>, vector<1x16x16xf32>
    %27 = vector.shape_cast %26 : vector<1x16x16xf32> to vector<16x16xf32>
    %cst_20 = arith.constant dense<0.000000e+00> : vector<16x256xf32>
    %28 = tpu.matmul %27, %25, %cst_20 {dimension_numbers = #tpu.dot_dimension_numbers<[1], [0], [0], [1], [0, 0, 1, 1], [], []>} : vector<16x16xf32>, vector<16x256xf32>, vector<16x256xf32> -> vector<16x256xf32>
    %29 = arith.addf %20, %28 : vector<16x256xf32>
    %c1_i32 = arith.constant 1 : i32
    %30 = tpu.dynamic_rotate %1 by %c1_i32 dim 1 : vector<16x256xf32>, i32 -> vector<16x256xf32>
    %c3 = arith.constant 3 : index
    %c0_21 = arith.constant 0 : index
    %c0_22 = arith.constant 0 : index
    %31 = vector.load %arg2[%c3, %c0_21, %c0_22] : memref<9x1x256xf32, #tpu.memory_space<vmem>>, vector<1x1x256xf32>
    %32 = vector.shape_cast %31 : vector<1x1x256xf32> to vector<1x256xf32>
    %33 = vector.broadcast %32 : vector<1x256xf32> to vector<16x256xf32>
    %34 = arith.mulf %30, %33 : vector<16x256xf32>
    %c3_23 = arith.constant 3 : index
    %c0_24 = arith.constant 0 : index
    %c0_25 = arith.constant 0 : index
    %35 = vector.load %arg3[%c3_23, %c0_24, %c0_25] : memref<9x16x16xf32, #tpu.memory_space<vmem>>, vector<1x16x16xf32>
    %36 = vector.shape_cast %35 : vector<1x16x16xf32> to vector<16x16xf32>
    %cst_26 = arith.constant dense<0.000000e+00> : vector<16x256xf32>
    %37 = tpu.matmul %36, %34, %cst_26 {dimension_numbers = #tpu.dot_dimension_numbers<[1], [0], [0], [1], [0, 0, 1, 1], [], []>} : vector<16x16xf32>, vector<16x256xf32>, vector<16x256xf32> -> vector<16x256xf32>
    %38 = arith.addf %29, %37 : vector<16x256xf32>
    %c4 = arith.constant 4 : index
    %c0_27 = arith.constant 0 : index
    %c0_28 = arith.constant 0 : index
    %39 = vector.load %arg3[%c4, %c0_27, %c0_28] : memref<9x16x16xf32, #tpu.memory_space<vmem>>, vector<1x16x16xf32>
    %40 = vector.shape_cast %39 : vector<1x16x16xf32> to vector<16x16xf32>
    %cst_29 = arith.constant dense<0.000000e+00> : vector<16x256xf32>
    %41 = tpu.matmul %40, %1, %cst_29 {dimension_numbers = #tpu.dot_dimension_numbers<[1], [0], [0], [1], [0, 0, 1, 1], [], []>} : vector<16x16xf32>, vector<16x256xf32>, vector<16x256xf32> -> vector<16x256xf32>
    %42 = arith.addf %38, %41 : vector<16x256xf32>
    %c255_i32 = arith.constant 255 : i32
    %43 = tpu.dynamic_rotate %1 by %c255_i32 dim 1 : vector<16x256xf32>, i32 -> vector<16x256xf32>
    %c5 = arith.constant 5 : index
    %c0_30 = arith.constant 0 : index
    %c0_31 = arith.constant 0 : index
    %44 = vector.load %arg2[%c5, %c0_30, %c0_31] : memref<9x1x256xf32, #tpu.memory_space<vmem>>, vector<1x1x256xf32>
    %45 = vector.shape_cast %44 : vector<1x1x256xf32> to vector<1x256xf32>
    %46 = vector.broadcast %45 : vector<1x256xf32> to vector<16x256xf32>
    %47 = arith.mulf %43, %46 : vector<16x256xf32>
    %c5_32 = arith.constant 5 : index
    %c0_33 = arith.constant 0 : index
    %c0_34 = arith.constant 0 : index
    %48 = vector.load %arg3[%c5_32, %c0_33, %c0_34] : memref<9x16x16xf32, #tpu.memory_space<vmem>>, vector<1x16x16xf32>
    %49 = vector.shape_cast %48 : vector<1x16x16xf32> to vector<16x16xf32>
    %cst_35 = arith.constant dense<0.000000e+00> : vector<16x256xf32>
    %50 = tpu.matmul %49, %47, %cst_35 {dimension_numbers = #tpu.dot_dimension_numbers<[1], [0], [0], [1], [0, 0, 1, 1], [], []>} : vector<16x16xf32>, vector<16x256xf32>, vector<16x256xf32> -> vector<16x256xf32>
    %51 = arith.addf %42, %50 : vector<16x256xf32>
    %c241_i32 = arith.constant 241 : i32
    %52 = tpu.dynamic_rotate %1 by %c241_i32 dim 1 : vector<16x256xf32>, i32 -> vector<16x256xf32>
    %c6 = arith.constant 6 : index
    %c0_36 = arith.constant 0 : index
    %c0_37 = arith.constant 0 : index
    %53 = vector.load %arg2[%c6, %c0_36, %c0_37] : memref<9x1x256xf32, #tpu.memory_space<vmem>>, vector<1x1x256xf32>
    %54 = vector.shape_cast %53 : vector<1x1x256xf32> to vector<1x256xf32>
    %55 = vector.broadcast %54 : vector<1x256xf32> to vector<16x256xf32>
    %56 = arith.mulf %52, %55 : vector<16x256xf32>
    %c6_38 = arith.constant 6 : index
    %c0_39 = arith.constant 0 : index
    %c0_40 = arith.constant 0 : index
    %57 = vector.load %arg3[%c6_38, %c0_39, %c0_40] : memref<9x16x16xf32, #tpu.memory_space<vmem>>, vector<1x16x16xf32>
    %58 = vector.shape_cast %57 : vector<1x16x16xf32> to vector<16x16xf32>
    %cst_41 = arith.constant dense<0.000000e+00> : vector<16x256xf32>
    %59 = tpu.matmul %58, %56, %cst_41 {dimension_numbers = #tpu.dot_dimension_numbers<[1], [0], [0], [1], [0, 0, 1, 1], [], []>} : vector<16x16xf32>, vector<16x256xf32>, vector<16x256xf32> -> vector<16x256xf32>
    %60 = arith.addf %51, %59 : vector<16x256xf32>
    %c240_i32 = arith.constant 240 : i32
    %61 = tpu.dynamic_rotate %1 by %c240_i32 dim 1 : vector<16x256xf32>, i32 -> vector<16x256xf32>
    %c7 = arith.constant 7 : index
    %c0_42 = arith.constant 0 : index
    %c0_43 = arith.constant 0 : index
    %62 = vector.load %arg2[%c7, %c0_42, %c0_43] : memref<9x1x256xf32, #tpu.memory_space<vmem>>, vector<1x1x256xf32>
    %63 = vector.shape_cast %62 : vector<1x1x256xf32> to vector<1x256xf32>
    %64 = vector.broadcast %63 : vector<1x256xf32> to vector<16x256xf32>
    %65 = arith.mulf %61, %64 : vector<16x256xf32>
    %c7_44 = arith.constant 7 : index
    %c0_45 = arith.constant 0 : index
    %c0_46 = arith.constant 0 : index
    %66 = vector.load %arg3[%c7_44, %c0_45, %c0_46] : memref<9x16x16xf32, #tpu.memory_space<vmem>>, vector<1x16x16xf32>
    %67 = vector.shape_cast %66 : vector<1x16x16xf32> to vector<16x16xf32>
    %cst_47 = arith.constant dense<0.000000e+00> : vector<16x256xf32>
    %68 = tpu.matmul %67, %65, %cst_47 {dimension_numbers = #tpu.dot_dimension_numbers<[1], [0], [0], [1], [0, 0, 1, 1], [], []>} : vector<16x16xf32>, vector<16x256xf32>, vector<16x256xf32> -> vector<16x256xf32>
    %69 = arith.addf %60, %68 : vector<16x256xf32>
    %c239_i32 = arith.constant 239 : i32
    %70 = tpu.dynamic_rotate %1 by %c239_i32 dim 1 : vector<16x256xf32>, i32 -> vector<16x256xf32>
    %c8 = arith.constant 8 : index
    %c0_48 = arith.constant 0 : index
    %c0_49 = arith.constant 0 : index
    %71 = vector.load %arg2[%c8, %c0_48, %c0_49] : memref<9x1x256xf32, #tpu.memory_space<vmem>>, vector<1x1x256xf32>
    %72 = vector.shape_cast %71 : vector<1x1x256xf32> to vector<1x256xf32>
    %73 = vector.broadcast %72 : vector<1x256xf32> to vector<16x256xf32>
    %74 = arith.mulf %70, %73 : vector<16x256xf32>
    %c8_50 = arith.constant 8 : index
    %c0_51 = arith.constant 0 : index
    %c0_52 = arith.constant 0 : index
    %75 = vector.load %arg3[%c8_50, %c0_51, %c0_52] : memref<9x16x16xf32, #tpu.memory_space<vmem>>, vector<1x16x16xf32>
    %76 = vector.shape_cast %75 : vector<1x16x16xf32> to vector<16x16xf32>
    %cst_53 = arith.constant dense<0.000000e+00> : vector<16x256xf32>
    %77 = tpu.matmul %76, %74, %cst_53 {dimension_numbers = #tpu.dot_dimension_numbers<[1], [0], [0], [1], [0, 0, 1, 1], [], []>} : vector<16x16xf32>, vector<16x256xf32>, vector<16x256xf32> -> vector<16x256xf32>
    %78 = arith.addf %69, %77 : vector<16x256xf32>
    %c0_54 = arith.constant 0 : index
    %c0_55 = arith.constant 0 : index
    %79 = vector.load %arg4[%c0_54, %c0_55] : memref<16x1xf32, #tpu.memory_space<vmem>>, vector<16x1xf32>
    %80 = vector.broadcast %79 : vector<16x1xf32> to vector<16x256xf32>
    %81 = arith.addf %78, %80 : vector<16x256xf32>
    %cst_56 = arith.constant 0.000000e+00 : f32
    %82 = vector.broadcast %cst_56 : f32 to vector<16x256xf32>
    %83 = arith.maximumf %81, %82 : vector<16x256xf32>
    %cst_57 = arith.constant 0.000000e+00 : f32
    %84 = vector.broadcast %cst_57 : f32 to vector<16x256xf32>
    %c17_i32_58 = arith.constant 17 : i32
    %85 = tpu.dynamic_rotate %83 by %c17_i32_58 dim 1 : vector<16x256xf32>, i32 -> vector<16x256xf32>
    %c0_59 = arith.constant 0 : index
    %c0_60 = arith.constant 0 : index
    %c0_61 = arith.constant 0 : index
    %86 = vector.load %arg2[%c0_59, %c0_60, %c0_61] : memref<9x1x256xf32, #tpu.memory_space<vmem>>, vector<1x1x256xf32>
    %87 = vector.shape_cast %86 : vector<1x1x256xf32> to vector<1x256xf32>
    %88 = vector.broadcast %87 : vector<1x256xf32> to vector<16x256xf32>
    %89 = arith.mulf %85, %88 : vector<16x256xf32>
    %c0_62 = arith.constant 0 : index
    %c0_63 = arith.constant 0 : index
    %c0_64 = arith.constant 0 : index
    %90 = vector.load %arg5[%c0_62, %c0_63, %c0_64] : memref<9x16x16xf32, #tpu.memory_space<vmem>>, vector<1x16x16xf32>
    %91 = vector.shape_cast %90 : vector<1x16x16xf32> to vector<16x16xf32>
    %cst_65 = arith.constant dense<0.000000e+00> : vector<16x256xf32>
    %92 = tpu.matmul %91, %89, %cst_65 {dimension_numbers = #tpu.dot_dimension_numbers<[1], [0], [0], [1], [0, 0, 1, 1], [], []>} : vector<16x16xf32>, vector<16x256xf32>, vector<16x256xf32> -> vector<16x256xf32>
    %93 = arith.addf %84, %92 : vector<16x256xf32>
    %c16_i32_66 = arith.constant 16 : i32
    %94 = tpu.dynamic_rotate %83 by %c16_i32_66 dim 1 : vector<16x256xf32>, i32 -> vector<16x256xf32>
    %c1_67 = arith.constant 1 : index
    %c0_68 = arith.constant 0 : index
    %c0_69 = arith.constant 0 : index
    %95 = vector.load %arg2[%c1_67, %c0_68, %c0_69] : memref<9x1x256xf32, #tpu.memory_space<vmem>>, vector<1x1x256xf32>
    %96 = vector.shape_cast %95 : vector<1x1x256xf32> to vector<1x256xf32>
    %97 = vector.broadcast %96 : vector<1x256xf32> to vector<16x256xf32>
    %98 = arith.mulf %94, %97 : vector<16x256xf32>
    %c1_70 = arith.constant 1 : index
    %c0_71 = arith.constant 0 : index
    %c0_72 = arith.constant 0 : index
    %99 = vector.load %arg5[%c1_70, %c0_71, %c0_72] : memref<9x16x16xf32, #tpu.memory_space<vmem>>, vector<1x16x16xf32>
    %100 = vector.shape_cast %99 : vector<1x16x16xf32> to vector<16x16xf32>
    %cst_73 = arith.constant dense<0.000000e+00> : vector<16x256xf32>
    %101 = tpu.matmul %100, %98, %cst_73 {dimension_numbers = #tpu.dot_dimension_numbers<[1], [0], [0], [1], [0, 0, 1, 1], [], []>} : vector<16x16xf32>, vector<16x256xf32>, vector<16x256xf32> -> vector<16x256xf32>
    %102 = arith.addf %93, %101 : vector<16x256xf32>
    %c15_i32_74 = arith.constant 15 : i32
    %103 = tpu.dynamic_rotate %83 by %c15_i32_74 dim 1 : vector<16x256xf32>, i32 -> vector<16x256xf32>
    %c2_75 = arith.constant 2 : index
    %c0_76 = arith.constant 0 : index
    %c0_77 = arith.constant 0 : index
    %104 = vector.load %arg2[%c2_75, %c0_76, %c0_77] : memref<9x1x256xf32, #tpu.memory_space<vmem>>, vector<1x1x256xf32>
    %105 = vector.shape_cast %104 : vector<1x1x256xf32> to vector<1x256xf32>
    %106 = vector.broadcast %105 : vector<1x256xf32> to vector<16x256xf32>
    %107 = arith.mulf %103, %106 : vector<16x256xf32>
    %c2_78 = arith.constant 2 : index
    %c0_79 = arith.constant 0 : index
    %c0_80 = arith.constant 0 : index
    %108 = vector.load %arg5[%c2_78, %c0_79, %c0_80] : memref<9x16x16xf32, #tpu.memory_space<vmem>>, vector<1x16x16xf32>
    %109 = vector.shape_cast %108 : vector<1x16x16xf32> to vector<16x16xf32>
    %cst_81 = arith.constant dense<0.000000e+00> : vector<16x256xf32>
    %110 = tpu.matmul %109, %107, %cst_81 {dimension_numbers = #tpu.dot_dimension_numbers<[1], [0], [0], [1], [0, 0, 1, 1], [], []>} : vector<16x16xf32>, vector<16x256xf32>, vector<16x256xf32> -> vector<16x256xf32>
    %111 = arith.addf %102, %110 : vector<16x256xf32>
    %c1_i32_82 = arith.constant 1 : i32
    %112 = tpu.dynamic_rotate %83 by %c1_i32_82 dim 1 : vector<16x256xf32>, i32 -> vector<16x256xf32>
    %c3_83 = arith.constant 3 : index
    %c0_84 = arith.constant 0 : index
    %c0_85 = arith.constant 0 : index
    %113 = vector.load %arg2[%c3_83, %c0_84, %c0_85] : memref<9x1x256xf32, #tpu.memory_space<vmem>>, vector<1x1x256xf32>
    %114 = vector.shape_cast %113 : vector<1x1x256xf32> to vector<1x256xf32>
    %115 = vector.broadcast %114 : vector<1x256xf32> to vector<16x256xf32>
    %116 = arith.mulf %112, %115 : vector<16x256xf32>
    %c3_86 = arith.constant 3 : index
    %c0_87 = arith.constant 0 : index
    %c0_88 = arith.constant 0 : index
    %117 = vector.load %arg5[%c3_86, %c0_87, %c0_88] : memref<9x16x16xf32, #tpu.memory_space<vmem>>, vector<1x16x16xf32>
    %118 = vector.shape_cast %117 : vector<1x16x16xf32> to vector<16x16xf32>
    %cst_89 = arith.constant dense<0.000000e+00> : vector<16x256xf32>
    %119 = tpu.matmul %118, %116, %cst_89 {dimension_numbers = #tpu.dot_dimension_numbers<[1], [0], [0], [1], [0, 0, 1, 1], [], []>} : vector<16x16xf32>, vector<16x256xf32>, vector<16x256xf32> -> vector<16x256xf32>
    %120 = arith.addf %111, %119 : vector<16x256xf32>
    %c4_90 = arith.constant 4 : index
    %c0_91 = arith.constant 0 : index
    %c0_92 = arith.constant 0 : index
    %121 = vector.load %arg5[%c4_90, %c0_91, %c0_92] : memref<9x16x16xf32, #tpu.memory_space<vmem>>, vector<1x16x16xf32>
    %122 = vector.shape_cast %121 : vector<1x16x16xf32> to vector<16x16xf32>
    %cst_93 = arith.constant dense<0.000000e+00> : vector<16x256xf32>
    %123 = tpu.matmul %122, %83, %cst_93 {dimension_numbers = #tpu.dot_dimension_numbers<[1], [0], [0], [1], [0, 0, 1, 1], [], []>} : vector<16x16xf32>, vector<16x256xf32>, vector<16x256xf32> -> vector<16x256xf32>
    %124 = arith.addf %120, %123 : vector<16x256xf32>
    %c255_i32_94 = arith.constant 255 : i32
    %125 = tpu.dynamic_rotate %83 by %c255_i32_94 dim 1 : vector<16x256xf32>, i32 -> vector<16x256xf32>
    %c5_95 = arith.constant 5 : index
    %c0_96 = arith.constant 0 : index
    %c0_97 = arith.constant 0 : index
    %126 = vector.load %arg2[%c5_95, %c0_96, %c0_97] : memref<9x1x256xf32, #tpu.memory_space<vmem>>, vector<1x1x256xf32>
    %127 = vector.shape_cast %126 : vector<1x1x256xf32> to vector<1x256xf32>
    %128 = vector.broadcast %127 : vector<1x256xf32> to vector<16x256xf32>
    %129 = arith.mulf %125, %128 : vector<16x256xf32>
    %c5_98 = arith.constant 5 : index
    %c0_99 = arith.constant 0 : index
    %c0_100 = arith.constant 0 : index
    %130 = vector.load %arg5[%c5_98, %c0_99, %c0_100] : memref<9x16x16xf32, #tpu.memory_space<vmem>>, vector<1x16x16xf32>
    %131 = vector.shape_cast %130 : vector<1x16x16xf32> to vector<16x16xf32>
    %cst_101 = arith.constant dense<0.000000e+00> : vector<16x256xf32>
    %132 = tpu.matmul %131, %129, %cst_101 {dimension_numbers = #tpu.dot_dimension_numbers<[1], [0], [0], [1], [0, 0, 1, 1], [], []>} : vector<16x16xf32>, vector<16x256xf32>, vector<16x256xf32> -> vector<16x256xf32>
    %133 = arith.addf %124, %132 : vector<16x256xf32>
    %c241_i32_102 = arith.constant 241 : i32
    %134 = tpu.dynamic_rotate %83 by %c241_i32_102 dim 1 : vector<16x256xf32>, i32 -> vector<16x256xf32>
    %c6_103 = arith.constant 6 : index
    %c0_104 = arith.constant 0 : index
    %c0_105 = arith.constant 0 : index
    %135 = vector.load %arg2[%c6_103, %c0_104, %c0_105] : memref<9x1x256xf32, #tpu.memory_space<vmem>>, vector<1x1x256xf32>
    %136 = vector.shape_cast %135 : vector<1x1x256xf32> to vector<1x256xf32>
    %137 = vector.broadcast %136 : vector<1x256xf32> to vector<16x256xf32>
    %138 = arith.mulf %134, %137 : vector<16x256xf32>
    %c6_106 = arith.constant 6 : index
    %c0_107 = arith.constant 0 : index
    %c0_108 = arith.constant 0 : index
    %139 = vector.load %arg5[%c6_106, %c0_107, %c0_108] : memref<9x16x16xf32, #tpu.memory_space<vmem>>, vector<1x16x16xf32>
    %140 = vector.shape_cast %139 : vector<1x16x16xf32> to vector<16x16xf32>
    %cst_109 = arith.constant dense<0.000000e+00> : vector<16x256xf32>
    %141 = tpu.matmul %140, %138, %cst_109 {dimension_numbers = #tpu.dot_dimension_numbers<[1], [0], [0], [1], [0, 0, 1, 1], [], []>} : vector<16x16xf32>, vector<16x256xf32>, vector<16x256xf32> -> vector<16x256xf32>
    %142 = arith.addf %133, %141 : vector<16x256xf32>
    %c240_i32_110 = arith.constant 240 : i32
    %143 = tpu.dynamic_rotate %83 by %c240_i32_110 dim 1 : vector<16x256xf32>, i32 -> vector<16x256xf32>
    %c7_111 = arith.constant 7 : index
    %c0_112 = arith.constant 0 : index
    %c0_113 = arith.constant 0 : index
    %144 = vector.load %arg2[%c7_111, %c0_112, %c0_113] : memref<9x1x256xf32, #tpu.memory_space<vmem>>, vector<1x1x256xf32>
    %145 = vector.shape_cast %144 : vector<1x1x256xf32> to vector<1x256xf32>
    %146 = vector.broadcast %145 : vector<1x256xf32> to vector<16x256xf32>
    %147 = arith.mulf %143, %146 : vector<16x256xf32>
    %c7_114 = arith.constant 7 : index
    %c0_115 = arith.constant 0 : index
    %c0_116 = arith.constant 0 : index
    %148 = vector.load %arg5[%c7_114, %c0_115, %c0_116] : memref<9x16x16xf32, #tpu.memory_space<vmem>>, vector<1x16x16xf32>
    %149 = vector.shape_cast %148 : vector<1x16x16xf32> to vector<16x16xf32>
    %cst_117 = arith.constant dense<0.000000e+00> : vector<16x256xf32>
    %150 = tpu.matmul %149, %147, %cst_117 {dimension_numbers = #tpu.dot_dimension_numbers<[1], [0], [0], [1], [0, 0, 1, 1], [], []>} : vector<16x16xf32>, vector<16x256xf32>, vector<16x256xf32> -> vector<16x256xf32>
    %151 = arith.addf %142, %150 : vector<16x256xf32>
    %c239_i32_118 = arith.constant 239 : i32
    %152 = tpu.dynamic_rotate %83 by %c239_i32_118 dim 1 : vector<16x256xf32>, i32 -> vector<16x256xf32>
    %c8_119 = arith.constant 8 : index
    %c0_120 = arith.constant 0 : index
    %c0_121 = arith.constant 0 : index
    %153 = vector.load %arg2[%c8_119, %c0_120, %c0_121] : memref<9x1x256xf32, #tpu.memory_space<vmem>>, vector<1x1x256xf32>
    %154 = vector.shape_cast %153 : vector<1x1x256xf32> to vector<1x256xf32>
    %155 = vector.broadcast %154 : vector<1x256xf32> to vector<16x256xf32>
    %156 = arith.mulf %152, %155 : vector<16x256xf32>
    %c8_122 = arith.constant 8 : index
    %c0_123 = arith.constant 0 : index
    %c0_124 = arith.constant 0 : index
    %157 = vector.load %arg5[%c8_122, %c0_123, %c0_124] : memref<9x16x16xf32, #tpu.memory_space<vmem>>, vector<1x16x16xf32>
    %158 = vector.shape_cast %157 : vector<1x16x16xf32> to vector<16x16xf32>
    %cst_125 = arith.constant dense<0.000000e+00> : vector<16x256xf32>
    %159 = tpu.matmul %158, %156, %cst_125 {dimension_numbers = #tpu.dot_dimension_numbers<[1], [0], [0], [1], [0, 0, 1, 1], [], []>} : vector<16x16xf32>, vector<16x256xf32>, vector<16x256xf32> -> vector<16x256xf32>
    %160 = arith.addf %151, %159 : vector<16x256xf32>
    %c0_126 = arith.constant 0 : index
    %c0_127 = arith.constant 0 : index
    %161 = vector.load %arg6[%c0_126, %c0_127] : memref<16x1xf32, #tpu.memory_space<vmem>>, vector<16x1xf32>
    %162 = vector.broadcast %161 : vector<16x1xf32> to vector<16x256xf32>
    %163 = arith.addf %160, %162 : vector<16x256xf32>
    %cst_128 = arith.constant 0.000000e+00 : f32
    %164 = vector.broadcast %cst_128 : f32 to vector<16x256xf32>
    %165 = arith.maximumf %163, %164 : vector<16x256xf32>
    %cst_129 = arith.constant dense<0.000000e+00> : vector<16xf32>
    %166 = vector.multi_reduction <add>, %165, %cst_129 [1] : vector<16x256xf32> to vector<16xf32>
    %167 = vector.shape_cast %166 : vector<16xf32> to vector<16x1xf32>
    %cst_130 = arith.constant 3.906250e-03 : f32
    %168 = vector.broadcast %cst_130 : f32 to vector<16x1xf32>
    %169 = arith.mulf %167, %168 : vector<16x1xf32>
    %c0_131 = arith.constant 0 : index
    %c0_132 = arith.constant 0 : index
    %170 = vector.load %arg7[%c0_131, %c0_132] : memref<16x2xf32, #tpu.memory_space<vmem>>, vector<16x2xf32>
    %171 = vector.broadcast %169 : vector<16x1xf32> to vector<16x2xf32>
    %172 = arith.mulf %170, %171 : vector<16x2xf32>
    %cst_133 = arith.constant dense<0.000000e+00> : vector<2xf32>
    %173 = vector.multi_reduction <add>, %172, %cst_133 [0] : vector<16x2xf32> to vector<2xf32>
    %174 = vector.shape_cast %173 : vector<2xf32> to vector<1x2xf32>
    %c0_134 = arith.constant 0 : index
    %c0_135 = arith.constant 0 : index
    %175 = vector.load %arg8[%c0_134, %c0_135] : memref<1x2xf32, #tpu.memory_space<vmem>>, vector<1x2xf32>
    %176 = arith.addf %174, %175 : vector<1x2xf32>
    %cst_136 = arith.constant 0.000000e+00 : f32
    %177 = vector.broadcast %cst_136 : f32 to vector<1x2xf32>
    %178 = arith.maximumf %176, %177 : vector<1x2xf32>
    %c0_137 = arith.constant 0 : index
    %c0_138 = arith.constant 0 : index
    %179 = vector.load %arg9[%c0_137, %c0_138] : memref<16x2xf32, #tpu.memory_space<vmem>>, vector<16x2xf32>
    %180 = vector.broadcast %178 : vector<1x2xf32> to vector<16x2xf32>
    %181 = arith.mulf %179, %180 : vector<16x2xf32>
    %cst_139 = arith.constant dense<0.000000e+00> : vector<16xf32>
    %182 = vector.multi_reduction <add>, %181, %cst_139 [1] : vector<16x2xf32> to vector<16xf32>
    %183 = vector.shape_cast %182 : vector<16xf32> to vector<16x1xf32>
    %c0_140 = arith.constant 0 : index
    %c0_141 = arith.constant 0 : index
    %184 = vector.load %arg10[%c0_140, %c0_141] : memref<16x1xf32, #tpu.memory_space<vmem>>, vector<16x1xf32>
    %185 = arith.addf %183, %184 : vector<16x1xf32>
    %cst_142 = arith.constant 0.000000e+00 : f32
    %186 = vector.broadcast %cst_142 : f32 to vector<16x1xf32>
    %187 = arith.subf %186, %185 : vector<16x1xf32>
    %188 = math.exp %187 : vector<16x1xf32>
    %cst_143 = arith.constant 1.000000e+00 : f32
    %189 = vector.broadcast %cst_143 : f32 to vector<16x1xf32>
    %190 = arith.addf %189, %188 : vector<16x1xf32>
    %cst_144 = arith.constant 1.000000e+00 : f32
    %191 = vector.broadcast %cst_144 : f32 to vector<16x1xf32>
    %192 = arith.divf %191, %190 : vector<16x1xf32>
    %193 = vector.broadcast %192 : vector<16x1xf32> to vector<16x256xf32>
    %194 = arith.mulf %165, %193 : vector<16x256xf32>
    %195 = arith.addf %1, %194 : vector<16x256xf32>
    %c0_145 = arith.constant 0 : index
    %c0_146 = arith.constant 0 : index
    %c0_147 = arith.constant 0 : index
    %196 = vector.load %arg11[%c0_145, %c0_146, %c0_147] : memref<1x16x256xf32, #tpu.memory_space<vmem>>, vector<1x16x256xf32>
    %197 = vector.shape_cast %196 : vector<1x16x256xf32> to vector<16x256xf32>
    %198 = vector.shape_cast %195 : vector<16x256xf32> to vector<1x16x256xf32>
    tpu.vector_store %arg11[%c0_145, %c0_146, %c0_147], %198 {strides = array<i32>} : memref<1x16x256xf32, #tpu.memory_space<vmem>>, vector<1x16x256xf32>,
    return
  }
  func.func @transform_0(%arg0: i32) -> (i32, i32, i32) {
    %c0_i32 = arith.constant 0 : i32
    %c0_i32_0 = arith.constant 0 : i32
    %c0_i32_1 = arith.constant 0 : i32
    return %arg0, %c0_i32, %c0_i32_0 : i32, i32, i32
  }
  func.func @transform_1(%arg0: i32) -> (i32, i32, i32) {
    %c0_i32 = arith.constant 0 : i32
    %c0_i32_0 = arith.constant 0 : i32
    %c0_i32_1 = arith.constant 0 : i32
    %c0_i32_2 = arith.constant 0 : i32
    return %c0_i32, %c0_i32_0, %c0_i32_1 : i32, i32, i32
  }
  func.func @transform_2(%arg0: i32) -> (i32, i32, i32) {
    %c0_i32 = arith.constant 0 : i32
    %c0_i32_0 = arith.constant 0 : i32
    %c0_i32_1 = arith.constant 0 : i32
    %c0_i32_2 = arith.constant 0 : i32
    return %c0_i32, %c0_i32_0, %c0_i32_1 : i32, i32, i32
  }
  func.func @transform_3(%arg0: i32) -> (i32, i32) {
    %c0_i32 = arith.constant 0 : i32
    %c0_i32_0 = arith.constant 0 : i32
    %c0_i32_1 = arith.constant 0 : i32
    return %c0_i32, %c0_i32_0 : i32, i32
  }
  func.func @transform_4(%arg0: i32) -> (i32, i32, i32) {
    %c0_i32 = arith.constant 0 : i32
    %c0_i32_0 = arith.constant 0 : i32
    %c0_i32_1 = arith.constant 0 : i32
    %c0_i32_2 = arith.constant 0 : i32
    return %c0_i32, %c0_i32_0, %c0_i32_1 : i32, i32, i32
  }
  func.func @transform_5(%arg0: i32) -> (i32, i32) {
    %c0_i32 = arith.constant 0 : i32
    %c0_i32_0 = arith.constant 0 : i32
    %c0_i32_1 = arith.constant 0 : i32
    return %c0_i32, %c0_i32_0 : i32, i32
  }
  func.func @transform_6(%arg0: i32) -> (i32, i32) {
    %c0_i32 = arith.constant 0 : i32
    %c0_i32_0 = arith.constant 0 : i32
    %c0_i32_1 = arith.constant 0 : i32
    return %c0_i32, %c0_i32_0 : i32, i32
  }
  func.func @transform_7(%arg0: i32) -> (i32, i32) {
    %c0_i32 = arith.constant 0 : i32
    %c0_i32_0 = arith.constant 0 : i32
    %c0_i32_1 = arith.constant 0 : i32
    return %c0_i32, %c0_i32_0 : i32, i32
  }
  func.func @transform_8(%arg0: i32) -> (i32, i32) {
    %c0_i32 = arith.constant 0 : i32
    %c0_i32_0 = arith.constant 0 : i32
    %c0_i32_1 = arith.constant 0 : i32
    return %c0_i32, %c0_i32_0 : i32, i32
  }
  func.func @transform_9(%arg0: i32) -> (i32, i32) {
    %c0_i32 = arith.constant 0 : i32
    %c0_i32_0 = arith.constant 0 : i32
    %c0_i32_1 = arith.constant 0 : i32
    return %c0_i32, %c0_i32_0 : i32, i32
  }
  func.func @transform_10(%arg0: i32) -> (i32, i32, i32) {
    %c0_i32 = arith.constant 0 : i32
    %c0_i32_0 = arith.constant 0 : i32
    %c0_i32_1 = arith.constant 0 : i32
    return %arg0, %c0_i32, %c0_i32_0 : i32, i32, i32
  }
}

</mosaic_0001>

<bundles_post_ra>
// kernel: tpu_custom_call.1
= control target key start
LH: loop header
LB: loop body
LE: loop exit
PB: predicated region body
PF: predicated region fallthrough
CT: control target
= control target key end

     0   :  { %15 = vsyncpa [#allocation3], 0  ;;  %s3814_s0 = inlined_call_operand.vmem [shape: f32[2,16,256], index: 0, kind: input, shape index: {}]   ;;  %s3815_s1 = inlined_call_operand.vmem [shape: f32[9,1,256], index: 1, kind: input, shape index: {}]   ;;  %s3816_s2 = inlined_call_operand.hbm [shape: f32[9,16,16], index: 2, kind: input, shape index: {}]   ;;  %s3817_s3 = inlined_call_operand.vmem [shape: f32[16,1], index: 3, kind: input, shape index: {}]   ;;  %s3818_s4 = inlined_call_operand.hbm [shape: f32[9,16,16], index: 4, kind: input, shape index: {}]   ;;  %s3819_s5 = inlined_call_operand.vmem [shape: f32[16,1], index: 5, kind: input, shape index: {}]   ;;  %s3820_s6 = inlined_call_operand.vmem [shape: f32[16,2], index: 6, kind: input, shape index: {}]   ;;  %s3821_s7 = inlined_call_operand.vmem [shape: f32[1,2], index: 7, kind: input, shape index: {}]   ;;  %s3822_s8 = inlined_call_operand.vmem [shape: f32[16,2], index: 8, kind: input, shape index: {}]   ;;  %s3823_s9 = inlined_call_operand.vmem [shape: f32[16,1], index: 9, kind: input, shape index: {}]   ;;  %s3824_s10 = inlined_call_operand.hbm [shape: f32[2,16,256], index: 10, kind: output, shape index: {}]  }
   0x1   :  { %16 = vsyncpa [#allocation6], 0 }
   0x2   :  { %17 = vsyncpa [#allocation4], 0 }
   0x3   :  { %19 = vsyncpa [#allocation4 + $0x1], 0  ;;  %s3062_s13 = smov 0   ;;  %s3064_s14 = smov 0  }
   0x4   :  { %s3066_s15 = smov 0   ;;  %s3068_s16 = smov 0  }
   0x5 LB: > { %3832 = sst [smem:[#allocation11_spill]] %s2985_s15  ;;  %s3083_s17 = sadd.s32 4294967295, %s2989_s16   ;;  %s2989_s16 = sphi %s3068_s16, %s3848_s16   ;;  %s2985_s15 = sphi %s3066_s15, %s3850_s15   ;;  %s2981_s14 = sphi %s3064_s14, %s3852_s14   ;;  %s2977_s13 = sphi %s3062_s13, %s3851_s13  }
   0x6   : > { %s2579_s18 = sadd.s32 4294967294, %s2989_s16   ;;  %s3087_s19 = sadd.s32 1, %s2989_s16  }
   0x7   : > { %3833 = sst [smem:[#allocation12_spill]] %s3087_s19  ;;  %s247_s20 = sadd.s32 1, %s2985_s15 }
   0x8   : > { %s244_s21 = ssub.s32 %s2989_s16, %s3087_s19  ;;  %p257_p0 = scmp.ne.s32.totalorder %s2985_s15, %s2981_s14 }
   0x9   : > { %p245_p1 = scmp.eq.s32.totalorder %s244_s21, 0  ;;  %p258_p2 = scmp.eq.s32.totalorder %s3083_s17, 1 }
   0xa   : > { %p263_p3 = scmp.ne.s32.totalorder %s2981_s14, %s2977_s13  ;;  %p264_p4 = scmp.eq.s32.totalorder %s2579_s18, 1 }
   0xb   : > { %s3098_s22 = scalar_select %p245_p1, %s2985_s15, %s247_s20  }
   0xc   : > { %p3100_p5 = por %p258_p2, %p257_p0  ;;  %p3104_p6 = por %p264_p4, %p263_p3 }
   0xd   : > { %3834 = sst [smem:[#allocation13_spill]] %s3098_s22  ;;  %p2580_p7 = scmp.ge.s32.totalorder %s2989_s16, 1 }
   0xe   : > { %s3835_s23 = scalar_select %p3100_p5, 1, 0 }
   0xf   : > { %s3836_s24 = scalar_select %p3104_p6, 1, 0 }
  0x10   : > { %p271_p8 = scmp.lt.s32.totalorder %s2989_s16, 3  ;;  %p3825_p9 = scmp.eq.s32.totalorder %s3083_s17, 0 }
  0x11   : > { %3837 = sst [smem:[#allocation14_spill]] %s3836_s24  ;;  %s2991_s26 = smov [#allocation2]  }
  0x12   : > { %p3111_p10 = pnand %p2580_p7, %p271_p8  ;;  %s286_s27 = sshll.u32 %s2991_s26, 4  ;;  %s287_s27 = int_to_ptr.vmem [resolvable:$true] %s286_s27 }
  0x13   : > { %s2992_s29 = smov [#allocation5]   ;;  %s2863_s18 = scalar_lea.hbm %s3816_s2, 2304 }
  0x14   : > { %s3838_s25 = scalar_select %p3111_p10, 1, 0 }
  0x15   : > { %p2786_p11 = pneg %p3111_p10  ;;  %s302_s30 = sshll.u32 %s2992_s29, 4  ;;  %s3123_s30 = int_to_ptr.vmem [resolvable:$true] %s302_s30 }
  0x16   : > { %p2864_p13 = scmp.ne.s32.totalorder %s3816_s2, %s2863_s18  ;;  %p2870_p3 = scmp.lt.u32.totalorder %s2863_s18, %s3816_s2 }
  0x17   : > { %p3119_p12 = pnand %p3825_p9, %p2786_p11 }
  0x19   : > { %p2865_p0 = pneg %p3119_p12 }
  0x1b   : > { %p2866_p1 = pnand %p2865_p0, %p2864_p13 }
  0x1d   : > { %p2867_p2 = pneg %p2866_p1 }
  0x1f   : > { %p2872_p4 = pnand %p2870_p3, %p2867_p2 }
  0x21   : > { %2875 = shalt.err (!%p2872_p4)
}
  0x22   : > { %s2876_s29 = scalar_lea.vmem %s287_s27, 2304  ;;  %p2884_p9 = scmp.lt.s32.totalorder %s287_s27, %s287_s27 }
  0x23   : > { %p2877_p7 = scmp.ne.s32.totalorder %s287_s27, %s2876_s29  ;;  %p2885_p6 = scmp.lt.s32.totalorder %s2876_s29, %s2876_s29 }
  0x25   : > { %p2879_p8 = pnand %p2877_p7, %p2865_p0  ;;  %p2886_p5 = por %p2885_p6, %p2884_p9 }
  0x27   : > { %p2880_p11 = pneg %p2879_p8 }
  0x29   : > { %p2887_p10 = pnand %p2886_p5, %p2880_p11 }
  0x2b   : > { %2890 = shalt.err (!%p2887_p10)
}
  0x2c   : > { %s2993_s11 = smov 128   ;;  %s2994_s12 = smov 8  }
  0x2d   : > { %2789 = dma.hbm_to_vmem [thread:$0]  (!%p3119_p12), %s3816_s2, 2304, %s287_s27, [#allocation3], %s2993_s11, %s2993_s11, %s2994_s12  }
  0x2e   : > { %s2891_s26 = scalar_lea.hbm %s3818_s4, 2304 }
  0x2f   : > { %p2892_p13 = scmp.ne.s32.totalorder %s3818_s4, %s2891_s26  ;;  %p2898_p9 = scmp.lt.u32.totalorder %s2891_s26, %s3818_s4 }
  0x31   : > { %p2894_p5 = pnand %p2892_p13, %p2865_p0 }
  0x33   : > { %p2895_p6 = pneg %p2894_p5 }
  0x35   : > { %p2900_p10 = pnand %p2898_p9, %p2895_p6 }
  0x37   : > { %2903 = shalt.err (!%p2900_p10)
}
  0x38   : > { %s2904_s27 = scalar_lea.vmem %s3123_s30, 2304  ;;  %p2912_p4 = scmp.lt.s32.totalorder %s3123_s30, %s3123_s30 }
  0x39   : > { %p2905_p1 = scmp.ne.s32.totalorder %s3123_s30, %s2904_s27  ;;  %p2913_p7 = scmp.lt.s32.totalorder %s2904_s27, %s2904_s27 }
  0x3b   : > { %p2907_p2 = pnand %p2905_p1, %p2865_p0  ;;  %p2914_p8 = por %p2913_p7, %p2912_p4 }
  0x3d   : > { %p2908_p3 = pneg %p2907_p2 }
  0x3f   : > { %p2915_p11 = pnand %p2914_p8, %p2908_p3 }
  0x41   : > { %2918 = shalt.err (!%p2915_p11)
}
  0x42   : > { %2792 = dma.hbm_to_vmem [thread:$0]  (!%p3119_p12), %s3818_s4, 2304, %s3123_s30, [#allocation6], %s2993_s11, %s2993_s11, %s2994_s12  }
  0x43   : > { %p3840_p13 = scmp.ne.s32.totalorder %s3838_s25, 0 }
  0x44   : > { %p3841_p5 = scmp.eq.s32.totalorder (!%p3840_p13), %s3083_s17, 0 }
  0x45   : > { %341 = sbr.rel (%p3840_p13) target bundleno = 1405 (0x57d), region = 60 }
  0x4c   : > { %2964 = dma.done.wait (%p3841_p5), [#allocation3], 2304   ;;  %p3842_p0 = pmov %p3841_p5 }
  0x4e   : > { %2966 = vsyncadd (%p3842_p0), [#allocation3], 4294964992  ;;  %p3843_p6 = pmov %p3842_p0 }
  0x4f   : > { %p3844_p9 = pmov %p3842_p0 }
  0x50   : > { %2968 = dma.done.wait (%p3843_p6), [#allocation6], 2304  }
  0x51   : > { %2970 = vsyncadd (%p3844_p9), [#allocation6], 4294964992  ;;  %p383_p10 = scmp.lt.s32.totalorder %s3083_s17, 1  ;;  %v2995_v2 = vmov 0.0   ;;  %s2996_s12 = smov 16   ;;  %v1435_v5 = vld [vmem:[%s3817_s3] sm:$0xff]  ;;  %v400_v8 = vlaneseq }
  0x52   : > { %529 = vmatprep.mubr.f32.mxu0 %v2995_v2  ;;  %1562 = vmatprep.mubr.f32.mxu1 %v2995_v2  ;;  %s2997_s22 = smov 17   ;;  %s2998_s18 = smov 15   ;;  %v1436_v6 = vld [vmem:[%s3817_s3 + $0x8] sm:$0xff]  ;;  %v3004_v7 = vmov 0   ;;  %v2590_v13 = vld [vmem:[%s3815_s1 + $0x2] sm:$0x3] }
  0x53   : > { %s384_s24 = scalar_select %p383_p10, %s3083_s17, 1  ;;  %2849 = vset.pattern.permute.xlu0 %v3004_v7  ;;  %2850 = vset.pattern.permute.xlu1 %v3004_v7  ;;  %v410_v9 = vshrl.u32 %v400_v8, 7  ;;  %v3273_v10 = vand.u32 127, %v400_v8  ;;  %v407_v28 = vld [vmem:[%s3815_s1] sm:$0x3]  ;;  %v456_v35 = vld [vmem:[#allocation2 + $0x10] sm:$0xff] }
  0x54   : > { %s2999_s20 = smov 1   ;;  %s3000_s21 = smov 127   ;;  %vm458_vm2 = vcmask 130048   ;;  %v457_v46 = vld [vmem:[#allocation2 + $0x18] sm:$0xff]  ;;  %v2595_v47 = vld [vmem:[%s3815_s1 + $0x4] sm:$0x3] }
  0x55   : > { %s2638_s28 = sshll.u32 %s384_s24, 5  ;;  %s3001_s26 = smov 113   ;;  %v3275_v11 = vsub.s32 0, %v410_v9  ;;  %v3277_v12 = vsub.s32 1, %v410_v9  ;;  %vm433_vm0 = vcmp.lt.s32.totalorder %v3273_v10, 16  ;;  %vm402_vm1 = vcmp.lt.s32.totalorder %v3273_v10, 17 }
  0x56   : > { %s3187_s11 = scalar_lea.vmem %s3814_s0, %s2638_s28  ;;  %s3002_s29 = smov 112   ;;  %vm633_vm3 = vcmp.lt.s32.totalorder %v3273_v10, 15  ;;  %v423_v54 = vld [vmem:[#allocation2] sm:$0xff]  ;;  %vm753_vm4 = vcmp.lt.s32.totalorder %v3273_v10, 1  ;;  %vm963_vm5 = vcmp.lt.s32.totalorder %v3273_v10, 127  ;;  %vm1083_vm6 = vcmp.lt.s32.totalorder %v3273_v10, 113 }
  0x57   : > { %v3190_v0 = vld [vmem:[%s3187_s11 + $0x8] sm:$0xff]  ;;  %v3193_v1 = vld [vmem:[%s3187_s11] sm:$0xff]  ;;  %v3202_v3 = vld [vmem:[%s3187_s11 + $0x18] sm:$0xff]  ;;  %s3003_s27 = smov 111   ;;  %v3284_v16 = vrot.slane %v2590_v13, %v3275_v11  ;;  %v3287_v17 = vrot.slane %v2590_v13, %v3277_v12  ;;  %v3306_v33 = vrot.slane %v407_v28, %v3275_v11  ;;  %v3309_v34 = vrot.slane %v407_v28, %v3277_v12  ;;  %s2639_s30 = sshll.u32 %s3083_s17, 9 }
  0x58   : > { %429 = vrot.lane.b32.xlu1 %v3190_v0, %s2996_s12  ;;  %425 = vrot.lane.b32.xlu0 %v3193_v1, %s2996_s12  ;;  %v3205_v4 = vld [vmem:[%s3187_s11 + $0x10] sm:$0xff]  ;;  %v3331_v52 = vrot.slane %v2595_v47, %v3275_v11  ;;  %v3334_v53 = vrot.slane %v2595_v47, %v3277_v12  ;;  %v2598_v7 = vld [vmem:[%s3815_s1 + $0x6] sm:$0x3]  ;;  %vm1203_vm7 = vcmp.lt.s32.totalorder %v3273_v10, 112  ;;  %vm1323_vm8 = vcmp.lt.s32.totalorder %v3273_v10, 111  ;;  %s3770_s15 = scalar_lea.hbm %s3824_s10, %s2639_s30  ;;  %p3845_p1 = scmp.ne.s32.totalorder %s3835_s23, 0 }
  0x59   : > { %v2295_v10 = vld [vmem:[#allocation5 + $0x80] sm:$0xff]  ;;  %vm2416_vm9 = vcmask 15360  }
  0x5c   : > { %431 = vrot.lane.b32.xlu1 %v3202_v3, %s2996_s12  ;;  %427 = vrot.lane.b32.xlu0 %v3205_v4, %s2996_s12 }
  0x60   : > { %394 = vrot.lane.b32.xlu1 %v3205_v4, %s2997_s22  ;;  %392 = vrot.lane.b32.xlu0 %v3193_v1, %s2997_s22 }
  0x64   : > { %398 = vrot.lane.b32.xlu1 %v3202_v3, %s2997_s22  ;;  %396 = vrot.lane.b32.xlu0 %v3190_v0, %s2997_s22 }
  0x68   : > { %627 = vrot.lane.b32.xlu1 %v3205_v4, %s2998_s18  ;;  %625 = vrot.lane.b32.xlu0 %v3193_v1, %s2998_s18 }
  0x6c   : > { %631 = vrot.lane.b32.xlu1 %v3202_v3, %s2998_s18  ;;  %629 = vrot.lane.b32.xlu0 %v3190_v0, %s2998_s18 }
  0x70   : > { %747 = vrot.lane.b32.xlu1 %v3205_v4, %s2999_s20  ;;  %745 = vrot.lane.b32.xlu0 %v3193_v1, %s2999_s20 }
  0x74   : > { %751 = vrot.lane.b32.xlu1 %v3202_v3, %s2999_s20  ;;  %749 = vrot.lane.b32.xlu0 %v3190_v0, %s2999_s20 }
  0x78   : > { %957 = vrot.lane.b32.xlu1 %v3205_v4, %s3000_s21  ;;  %955 = vrot.lane.b32.xlu0 %v3193_v1, %s3000_s21 }
  0x7c   : > { %961 = vrot.lane.b32.xlu1 %v3202_v3, %s3000_s21  ;;  %959 = vrot.lane.b32.xlu0 %v3190_v0, %s3000_s21 }
  0x80   : > { %1077 = vrot.lane.b32.xlu1 %v3205_v4, %s3001_s26  ;;  %1075 = vrot.lane.b32.xlu0 %v3193_v1, %s3001_s26 }
  0x84   : > { %1081 = vrot.lane.b32.xlu1 %v3202_v3, %s3001_s26  ;;  %1079 = vrot.lane.b32.xlu0 %v3190_v0, %s3001_s26 }
  0x88   : > { %1197 = vrot.lane.b32.xlu1 %v3205_v4, %s3002_s29  ;;  %1195 = vrot.lane.b32.xlu0 %v3193_v1, %s3002_s29 }
  0x8c   : > { %1201 = vrot.lane.b32.xlu1 %v3202_v3, %s3002_s29  ;;  %1199 = vrot.lane.b32.xlu0 %v3190_v0, %s3002_s29 }
  0x90   : > { %1317 = vrot.lane.b32.xlu1 %v3205_v4, %s3003_s27  ;;  %1315 = vrot.lane.b32.xlu0 %v3193_v1, %s3003_s27 }
  0x94   : > { %1321 = vrot.lane.b32.xlu1 %v3202_v3, %s3003_s27  ;;  %1319 = vrot.lane.b32.xlu0 %v3190_v0, %s3003_s27 }
  0x98   : > { %1439 = vperm.xlu0 %2849, %v1435_v5   ;;  %1444 = vperm.xlu1 %2850, %v1436_v6   ;;  %v424_v6 = vld [vmem:[#allocation2 + $0x8] sm:$0xff] }
  0xca   : > { %v430_v14 = vpop.permute.xlu1 %429  ;;  %v426_v15 = vpop.permute.xlu0 %425 }
  0xcb   : > { %v434_v18 = vsel %vm433_vm0, %v426_v15, %v430_v14  ;;  %v436_v19 = vsel %vm433_vm0, %v430_v14, %v426_v15  ;;  %v3357_v15 = vrot.slane %v2598_v7, %v3275_v11 }
  0xcc   : > { %v451_v24 = vmul.f32 %v3284_v16, %v436_v19  ;;  %v452_v26 = vmul.f32 %v3287_v17, %v434_v18  ;;  %v3360_v18 = vrot.slane %v2598_v7, %v3277_v12  ;;  %v656_v19 = vld [vmem:[#allocation2 + $0x20] sm:$0xff] }
  0xce   : > { %v432_v20 = vpop.permute.xlu1 %431  ;;  %v428_v21 = vpop.permute.xlu0 %427 }
  0xcf   : > { %v435_v22 = vsel %vm433_vm0, %v428_v21, %v432_v20  ;;  %v437_v23 = vsel %vm433_vm0, %v432_v20, %v428_v21 }
  0xd0   : > { %v453_v25 = vmul.f32 %v3284_v16, %v437_v23  ;;  %v454_v27 = vmul.f32 %v3287_v17, %v435_v22 }
  0xd2   : > { %v395_v29 = vpop.permute.xlu1 %394  ;;  %v393_v30 = vpop.permute.xlu0 %392  ;;  %v2640_v31 = vpack.c.bf16 %v454_v27, %v452_v26  ;;  %v2642_v32 = vpack.c.bf16 %v453_v25, %v451_v24 }
  0xd4   : > { %2641 = vmatprep.subr.bf16.mxu0 %v2640_v31  ;;  %v2603_v31 = vld [vmem:[%s3815_s1 + $0xa] sm:$0x3] }
  0xd5   : > { %2643 = vmatpush1.bf16.msra.mxu0 %v2642_v32 }
  0xd6   : > { %v399_v36 = vpop.permute.xlu1 %398  ;;  %v397_v37 = vpop.permute.xlu0 %396 }
  0xd7   : > { %v404_v38 = vsel %vm402_vm1, %v395_v29, %v399_v36  ;;  %v406_v39 = vsel %vm402_vm1, %v399_v36, %v395_v29  ;;  %v403_v40 = vsel %vm402_vm1, %v393_v30, %v397_v37  ;;  %v405_v41 = vsel %vm402_vm1, %v397_v37, %v393_v30  ;;  %v657_v30 = vld [vmem:[#allocation2 + $0x28] sm:$0xff] }
  0xd8   : > { %v421_v42 = vmul.f32 %v3306_v33, %v406_v39  ;;  %v422_v43 = vmul.f32 %v3309_v34, %v404_v38  ;;  %v419_v44 = vmul.f32 %v3306_v33, %v405_v41  ;;  %v420_v45 = vmul.f32 %v3309_v34, %v403_v40  ;;  %2591 = vmatmul.mubr.msk.f32.vlgmr.msra.gmra.mrb[0].mxu0 %vm458_vm2, %v456_v35  ;;  %v776_v40 = vld [vmem:[#allocation2 + $0x30] sm:$0xff] }
  0xd9   : > { %535 = vmatprep.mubr.f32.mxu0 %v2995_v2  ;;  %v2656_v38 = vpack.c.bf16 %v3202_v3, %v3190_v0  ;;  %v3385_v39 = vrot.slane %v2603_v31, %v3277_v12  ;;  %v3389_v41 = vrot.slane %v2603_v31, %v3275_v11 }
  0xda   : > { %v2646_v48 = vpack.c.bf16 %v421_v42, %v419_v44  ;;  %v628_v49 = vpop.permute.xlu1 %627  ;;  %v626_v50 = vpop.permute.xlu0 %625  ;;  %v2644_v51 = vpack.c.bf16 %v422_v43, %v420_v45  ;;  %v2658_v42 = vpack.c.bf16 %v3205_v4, %v3193_v1 }
  0xdc   : > { %2592 = vmatmul.mubr.msk.f32.gmra.mrb[2].mxu0 %vm458_vm2, %v457_v46  ;;  %2645 = vmatprep.subr.bf16.mxu0 %v2644_v51 }
  0xdd   : > { %2647 = vmatpush1.bf16.msra.mxu0 %v2646_v48  ;;  %612 = vmatprep.mubr.f32.mxu0 %v2995_v2 }
  0xde   : > { %v632_v55 = vpop.permute.xlu1 %631  ;;  %v630_v56 = vpop.permute.xlu0 %629 }
  0xdf   : > { %v635_v57 = vsel %vm633_vm3, %v628_v49, %v632_v55  ;;  %v637_v58 = vsel %vm633_vm3, %v632_v55, %v628_v49  ;;  %v634_v59 = vsel %vm633_vm3, %v626_v50, %v630_v56  ;;  %v636_v60 = vsel %vm633_vm3, %v630_v56, %v626_v50  ;;  %v777_v49 = vld [vmem:[#allocation2 + $0x38] sm:$0xff]  ;;  %v2606_v50 = vld [vmem:[%s3815_s1 + $0xc] sm:$0x3] }
  0xe0   : > { %v653_v61 = vmul.f32 %v3331_v52, %v637_v58  ;;  %v654_v62 = vmul.f32 %v3334_v53, %v635_v57  ;;  %v651_v63 = vmul.f32 %v3331_v52, %v636_v60  ;;  %v652_v5 = vmul.f32 %v3334_v53, %v634_v59  ;;  %2593 = vmatmul.mubr.msk.f32.vlgmr.msra.gmra.mrb[0].mxu0 %vm458_vm2, %v423_v54  ;;  %v866_v58 = vld [vmem:[#allocation2 + $0x40] sm:$0xff] }
  0xe1   : > { %618 = vmatprep.mubr.f32.mxu0 %v2995_v2  ;;  %v3413_v56 = vrot.slane %v2606_v50, %v3277_v12  ;;  %v3417_v59 = vrot.slane %v2606_v50, %v3275_v11 }
  0xe2   : > { %v2650_v8 = vpack.c.bf16 %v653_v61, %v651_v63  ;;  %v748_v9 = vpop.permute.xlu1 %747  ;;  %v746_v13 = vpop.permute.xlu0 %745  ;;  %v2648_v14 = vpack.c.bf16 %v654_v62, %v652_v5 }
  0xe4   : > { %2594 = vmatmul.mubr.msk.f32.gmra.mrb[2].mxu0 %vm458_vm2, %v424_v6  ;;  %2649 = vmatprep.subr.bf16.mxu0 %v2648_v14  ;;  %v867_v14 = vld [vmem:[#allocation2 + $0x48] sm:$0xff] }
  0xe5   : > { %2651 = vmatpush1.bf16.msra.mxu0 %v2650_v8  ;;  %728 = vmatprep.mubr.f32.mxu0 %v2995_v2 }
  0xe6   : > { %v752_v20 = vpop.permute.xlu1 %751  ;;  %v750_v21 = vpop.permute.xlu0 %749 }
  0xe7   : > { %v755_v22 = vsel %vm753_vm4, %v748_v9, %v752_v20  ;;  %v757_v23 = vsel %vm753_vm4, %v752_v20, %v748_v9  ;;  %v754_v24 = vsel %vm753_vm4, %v746_v13, %v750_v21  ;;  %v756_v25 = vsel %vm753_vm4, %v750_v21, %v746_v13 }
  0xe8   : > { %v773_v26 = vmul.f32 %v3357_v15, %v757_v23  ;;  %v774_v27 = vmul.f32 %v3360_v18, %v755_v22  ;;  %v771_v28 = vmul.f32 %v3357_v15, %v756_v25  ;;  %v772_v29 = vmul.f32 %v3360_v18, %v754_v24  ;;  %2596 = vmatmul.mubr.msk.f32.vlgmr.msra.gmra.mrb[0].mxu0 %vm458_vm2, %v656_v19  ;;  %v2609_v19 = vld [vmem:[%s3815_s1 + $0xe] sm:$0x3]  ;;  %v986_v25 = vld [vmem:[#allocation2 + $0x50] sm:$0xff] }
  0xe9   : > { %734 = vmatprep.mubr.f32.mxu0 %v2995_v2  ;;  %v3439_v23 = vrot.slane %v2609_v19, %v3277_v12 }
  0xea   : > { %v2654_v32 = vpack.c.bf16 %v773_v26, %v771_v28  ;;  %v2652_v35 = vpack.c.bf16 %v774_v27, %v772_v29  ;;  %v958_v36 = vpop.permute.xlu1 %957  ;;  %v956_v37 = vpop.permute.xlu0 %955  ;;  %v3443_v26 = vrot.slane %v2609_v19, %v3275_v11 }
  0xec   : > { %2597 = vmatmul.mubr.msk.f32.gmra.mrb[2].mxu0 %vm458_vm2, %v657_v30  ;;  %2653 = vmatprep.subr.bf16.mxu0 %v2652_v35 }
  0xed   : > { %2655 = vmatpush1.bf16.msra.mxu0 %v2654_v32  ;;  %848 = vmatprep.mubr.f32.mxu0 %v2995_v2 }
  0xee   : > { %v962_v43 = vpop.permute.xlu1 %961  ;;  %v960_v0 = vpop.permute.xlu0 %959  ;;  %2657 = vmatprep.subr.bf16.mxu0 %v2656_v38 }
  0xef   : > { %v965_v3 = vsel %vm963_vm5, %v958_v36, %v962_v43  ;;  %v967_v44 = vsel %vm963_vm5, %v962_v43, %v958_v36  ;;  %v964_v45 = vsel %vm963_vm5, %v956_v37, %v960_v0  ;;  %v966_v46 = vsel %vm963_vm5, %v960_v0, %v956_v37 }
  0xf0   : > { %2599 = vmatmul.mubr.msk.f32.vlgmr.msra.gmra.mrb[0].mxu0 %vm458_vm2, %v776_v40  ;;  %v984_v47 = vmul.f32 %v3385_v39, %v967_v44  ;;  %v982_v1 = vmul.f32 %v3385_v39, %v966_v46  ;;  %v983_v4 = vmul.f32 %v3389_v41, %v965_v3  ;;  %v981_v48 = vmul.f32 %v3389_v41, %v964_v45  ;;  %v987_v40 = vld [vmem:[#allocation2 + $0x58] sm:$0xff]  ;;  %v1106_v46 = vld [vmem:[#allocation2 + $0x60] sm:$0xff] }
  0xf1   : > { %854 = vmatprep.mubr.f32.mxu0 %v2995_v2  ;;  %2659 = vmatpush1.bf16.msra.mxu0 %v2658_v42  ;;  %v2612_v42 = vld [vmem:[%s3815_s1 + $0x10] sm:$0x3] }
  0xf2   : > { %v1078_v51 = vpop.permute.xlu1 %1077  ;;  %v1076_v54 = vpop.permute.xlu0 %1075  ;;  %v2660_v55 = vpack.c.bf16 %v984_v47, %v982_v1  ;;  %v2662_v57 = vpack.c.bf16 %v983_v4, %v981_v48  ;;  %v3465_v44 = vrot.slane %v2612_v42, %v3277_v12  ;;  %v3469_v47 = vrot.slane %v2612_v42, %v3275_v11 }
  0xf4   : > { %2600 = vmatmul.mubr.msk.f32.gmra.mrb[2].mxu0 %vm458_vm2, %v777_v49  ;;  %2661 = vmatprep.subr.bf16.mxu0 %v2660_v55 }
  0xf5   : > { %938 = vmatprep.mubr.f32.mxu0 %v2995_v2 }
  0xf6   : > { %v1082_v60 = vpop.permute.xlu1 %1081  ;;  %v1080_v61 = vpop.permute.xlu0 %1079 }
  0xf7   : > { %v1085_v62 = vsel %vm1083_vm6, %v1078_v51, %v1082_v60  ;;  %v1087_v63 = vsel %vm1083_vm6, %v1082_v60, %v1078_v51  ;;  %v1084_v5 = vsel %vm1083_vm6, %v1076_v54, %v1080_v61  ;;  %v1086_v6 = vsel %vm1083_vm6, %v1080_v61, %v1076_v54 }
  0xf8   : > { %2601 = vmatmul.mubr.msk.f32.vlgmr.msra.gmra.mrb[0].mxu0 %vm458_vm2, %v866_v58  ;;  %v1104_v7 = vmul.f32 %v3413_v56, %v1087_v63  ;;  %v1102_v8 = vmul.f32 %v3413_v56, %v1086_v6  ;;  %v1103_v9 = vmul.f32 %v3417_v59, %v1085_v62  ;;  %v1101_v13 = vmul.f32 %v3417_v59, %v1084_v5  ;;  %v1107_v58 = vld [vmem:[#allocation2 + $0x68] sm:$0xff]  ;;  %v1226_v62 = vld [vmem:[#allocation2 + $0x70] sm:$0xff]  ;;  %v1227_v63 = vld [vmem:[#allocation2 + $0x78] sm:$0xff] }
  0xf9   : > { %2663 = vmatpush1.bf16.msra.mxu0 %v2662_v57  ;;  %944 = vmatprep.mubr.f32.mxu0 %v2995_v2  ;;  %v1346_v5 = vld [vmem:[#allocation2 + $0x80] sm:$0xff]  ;;  %v1347_v6 = vld [vmem:[#allocation2 + $0x88] sm:$0xff] }
  0xfa   : > { %v1198_v20 = vpop.permute.xlu1 %1197  ;;  %v1196_v21 = vpop.permute.xlu0 %1195  ;;  %v2664_v22 = vpack.c.bf16 %v1104_v7, %v1102_v8  ;;  %v2666_v24 = vpack.c.bf16 %v1103_v9, %v1101_v13 }
  0xfc   : > { %2602 = vmatmul.mubr.msk.f32.gmra.mrb[2].mxu0 %vm458_vm2, %v867_v14  ;;  %2665 = vmatprep.subr.bf16.mxu0 %v2664_v22 }
  0xfd   : > { %1058 = vmatprep.mubr.f32.mxu0 %v2995_v2 }
  0xfe   : > { %v1202_v27 = vpop.permute.xlu1 %1201  ;;  %v1200_v28 = vpop.permute.xlu0 %1199 }
  0xff   : > { %v1205_v29 = vsel %vm1203_vm7, %v1198_v20, %v1202_v27  ;;  %v1207_v30 = vsel %vm1203_vm7, %v1202_v27, %v1198_v20  ;;  %v1204_v31 = vsel %vm1203_vm7, %v1196_v21, %v1200_v28  ;;  %v1206_v32 = vsel %vm1203_vm7, %v1200_v28, %v1196_v21 }
 0x100   : > { %2604 = vmatmul.mubr.msk.f32.vlgmr.msra.gmra.mrb[0].mxu0 %vm458_vm2, %v986_v25  ;;  %v1224_v35 = vmul.f32 %v3439_v23, %v1207_v30  ;;  %v1222_v36 = vmul.f32 %v3439_v23, %v1206_v32  ;;  %v1223_v37 = vmul.f32 %v3443_v26, %v1205_v29  ;;  %v1221_v38 = vmul.f32 %v3443_v26, %v1204_v31  ;;  %v2384_v32 = vld [vmem:[%s3819_s5] sm:$0xff] }
 0x101   : > { %2667 = vmatpush1.bf16.msra.mxu0 %v2666_v24  ;;  %1064 = vmatprep.mubr.f32.mxu0 %v2995_v2 }
 0x102   : > { %v1318_v43 = vpop.permute.xlu1 %1317  ;;  %v1316_v0 = vpop.permute.xlu0 %1315  ;;  %v2668_v3 = vpack.c.bf16 %v1224_v35, %v1222_v36  ;;  %v2670_v45 = vpack.c.bf16 %v1223_v37, %v1221_v38  ;;  %v2385_v35 = vld [vmem:[%s3819_s5 + $0x8] sm:$0xff] }
 0x104   : > { %2605 = vmatmul.mubr.msk.f32.gmra.mrb[2].mxu0 %vm458_vm2, %v987_v40  ;;  %2669 = vmatprep.subr.bf16.mxu0 %v2668_v3 }
 0x105   : > { %1178 = vmatprep.mubr.f32.mxu0 %v2995_v2 }
 0x106   : > { %v1322_v1 = vpop.permute.xlu1 %1321  ;;  %v1320_v4 = vpop.permute.xlu0 %1319 }
 0x107   : > { %v1325_v48 = vsel %vm1323_vm8, %v1318_v43, %v1322_v1  ;;  %v1327_v49 = vsel %vm1323_vm8, %v1322_v1, %v1318_v43  ;;  %v1324_v50 = vsel %vm1323_vm8, %v1316_v0, %v1320_v4  ;;  %v1326_v12 = vsel %vm1323_vm8, %v1320_v4, %v1316_v0 }
 0x108   : > { %2607 = vmatmul.mubr.msk.f32.vlgmr.msra.gmra.mrb[0].mxu0 %vm458_vm2, %v1106_v46  ;;  %v1344_v51 = vmul.f32 %v3465_v44, %v1327_v49  ;;  %v1342_v54 = vmul.f32 %v3465_v44, %v1326_v12  ;;  %v1343_v55 = vmul.f32 %v3469_v47, %v1325_v48  ;;  %v1341_v57 = vmul.f32 %v3469_v47, %v1324_v50 }
 0x109   : > { %2671 = vmatpush1.bf16.msra.mxu0 %v2670_v45  ;;  %1184 = vmatprep.mubr.f32.mxu0 %v2995_v2 }
 0x10a   : > { %v2672_v60 = vpack.c.bf16 %v1344_v51, %v1342_v54  ;;  %v2674_v61 = vpack.c.bf16 %v1343_v55, %v1341_v57  ;;  %v1490_v57 = vld [vmem:[#allocation5 + $0x10] sm:$0xff] }
 0x10c   : > { %2608 = vmatmul.mubr.msk.f32.gmra.mrb[2].mxu0 %vm458_vm2, %v1107_v58  ;;  %2673 = vmatprep.subr.bf16.mxu0 %v2672_v60 }
 0x10d   : > { %1298 = vmatprep.mubr.f32.mxu0 %v2995_v2 }
 0x110   : > { %2610 = vmatmul.mubr.msk.f32.vlgmr.msra.gmra.mrb[0].mxu0 %vm458_vm2, %v1226_v62 }
 0x111   : > { %2675 = vmatpush1.bf16.msra.mxu0 %v2674_v61  ;;  %1304 = vmatprep.mubr.f32.mxu0 %v2995_v2 }
 0x114   : > { %2611 = vmatmul.mubr.msk.f32.gmra.mrb[2].mxu0 %vm458_vm2, %v1227_v63 }
 0x115   : > { %1418 = vmatprep.mubr.f32.mxu0 %v2995_v2 }
 0x117   : > { %v1440_v7 = vpop.permute.xlu0 %1439  ;;  %v1445_v14 = vpop.permute.xlu1 %1444 }
 0x118   : > { %2613 = vmatmul.mubr.msk.f32.vlgmr.msra.gmra.mrb[0].mxu0 %vm458_vm2, %v1346_v5 }
 0x119   : > { %1424 = vmatprep.mubr.f32.mxu0 %v2995_v2 }
 0x11c   : > { %2614 = vmatmul.mubr.msk.f32.gmra.mrb[2].mxu0 %vm458_vm2, %v1347_v6  ;;  %v1491_v6 = vld [vmem:[#allocation5 + $0x18] sm:$0xff] }
 0x1eb   : > { %v1420_v8 = vpop.f32.mrb[0].mxu0 }
 0x1ec   : > { %v1447_v9 = vadd.f32 %v1440_v7, %v1420_v8  ;;  %v1422_v13 = vpop.f32.mrb[1].mxu0 }
 0x1ed   : > { %v1448_v20 = vadd.f32 %v1440_v7, %v1422_v13 }
 0x1ee   : > { %v3494_v19 = vmax.f32 %v1447_v9, 0.0 }
 0x1ef   : > { %v1426_v21 = vpop.f32.mrb[2].mxu0  ;;  %v3498_v27 = vmax.f32 %v1448_v20, 0.0 }
 0x1f0   : > { %v1449_v22 = vadd.f32 %v1445_v14, %v1426_v21  ;;  %1473 = vrot.lane.b32.xlu1 %v3494_v19, %s2996_s12  ;;  %v1428_v24 = vpop.f32.mrb[3].mxu0 }
 0x1f1   : > { %v1450_v25 = vadd.f32 %v1445_v14, %v1428_v24 }
 0x1f2   : > { %v3500_v28 = vmax.f32 %v1449_v22, 0.0 }
 0x1f3   : > { %v3502_v29 = vmax.f32 %v1450_v25, 0.0 }
 0x1f4   : > { %1477 = vrot.lane.b32.xlu1 %v3498_v27, %s2996_s12  ;;  %1475 = vrot.lane.b32.xlu0 %v3500_v28, %s2996_s12  ;;  %v2694_v30 = vpack.c.bf16 %v3500_v28, %v3494_v19 }
 0x1f5   : > { %v2692_v31 = vpack.c.bf16 %v3502_v29, %v3498_v27 }
 0x1f8   : > { %1455 = vrot.lane.b32.xlu1 %v3494_v19, %s2997_s22  ;;  %1479 = vrot.lane.b32.xlu0 %v3502_v29, %s2996_s12 }
 0x1fc   : > { %1459 = vrot.lane.b32.xlu1 %v3498_v27, %s2997_s22  ;;  %1457 = vrot.lane.b32.xlu0 %v3500_v28, %s2997_s22 }
 0x200   : > { %1658 = vrot.lane.b32.xlu1 %v3494_v19, %s2998_s18  ;;  %1461 = vrot.lane.b32.xlu0 %v3502_v29, %s2997_s22 }
 0x204   : > { %1662 = vrot.lane.b32.xlu1 %v3498_v27, %s2998_s18  ;;  %1660 = vrot.lane.b32.xlu0 %v3500_v28, %s2998_s18 }
 0x208   : > { %1764 = vrot.lane.b32.xlu1 %v3494_v19, %s2999_s20  ;;  %1664 = vrot.lane.b32.xlu0 %v3502_v29, %s2998_s18  ;;  %s3005_s18 = smov [#allocation7]  }
 0x20c   : > { %1768 = vrot.lane.b32.xlu1 %v3498_v27, %s2999_s20  ;;  %1766 = vrot.lane.b32.xlu0 %v3500_v28, %s2999_s20 }
 0x210   : > { %1960 = vrot.lane.b32.xlu1 %v3494_v19, %s3000_s21  ;;  %1770 = vrot.lane.b32.xlu0 %v3502_v29, %s2999_s20 }
 0x214   : > { %1964 = vrot.lane.b32.xlu1 %v3498_v27, %s3000_s21  ;;  %1962 = vrot.lane.b32.xlu0 %v3500_v28, %s3000_s21 }
 0x218   : > { %2066 = vrot.lane.b32.xlu1 %v3494_v19, %s3001_s26  ;;  %1966 = vrot.lane.b32.xlu0 %v3502_v29, %s3000_s21 }
 0x21c   : > { %2070 = vrot.lane.b32.xlu1 %v3498_v27, %s3001_s26  ;;  %2068 = vrot.lane.b32.xlu0 %v3500_v28, %s3001_s26 }
 0x220   : > { %2172 = vrot.lane.b32.xlu1 %v3494_v19, %s3002_s29  ;;  %2072 = vrot.lane.b32.xlu0 %v3502_v29, %s3001_s26 }
 0x224   : > { %2176 = vrot.lane.b32.xlu1 %v3498_v27, %s3002_s29  ;;  %2174 = vrot.lane.b32.xlu0 %v3500_v28, %s3002_s29 }
 0x228   : > { %2278 = vrot.lane.b32.xlu1 %v3494_v19, %s3003_s27  ;;  %2178 = vrot.lane.b32.xlu0 %v3502_v29, %s3002_s29  ;;  %s380_s29 = sand.u32 1, %s2981_s14  }
 0x229   : > { %s3772_s19 = scalar_lea.sflag [#allocation4], %s380_s29 }
 0x22c   : > { %2282 = vrot.lane.b32.xlu1 %v3498_v27, %s3003_s27  ;;  %2280 = vrot.lane.b32.xlu0 %v3500_v28, %s3003_s27  ;;  %v1782_v27 = vld [vmem:[#allocation5 + $0x38] sm:$0xff]  ;;  %v1871_v28 = vld [vmem:[#allocation5 + $0x40] sm:$0xff] }
 0x230   : > { %2388 = vperm.xlu1 %2850, %v2384_v32   ;;  %2284 = vrot.lane.b32.xlu0 %v3502_v29, %s3003_s27  ;;  %s2587_s27 = sshll.u32 %s380_s29, 5 }
 0x231   : > { %s382_s24 = scalar_lea.vmem [#allocation7], %s2587_s27 }
 0x232   : > { %s2495_s28 = sshll.u32 %s382_s24, 4  ;;  %s3761_s28 = int_to_ptr.vmem [resolvable:$true] %s2495_s28 }
 0x233   : > { %s2919_s22 = scalar_lea.vmem %s3761_s28, 512 }
 0x234   : > { %2393 = vperm.xlu0 %2849, %v2385_v35   ;;  %p2920_p12 = scmp.ne.s32.totalorder %s3761_s28, %s2919_s22 }
 0x236   : > { %p2921_p2 = pnand %p2920_p12, %p3845_p1 }
 0x238   : > { %p2922_p3 = pneg %p2921_p2 }
 0x262   : > { %v1474_v36 = vpop.permute.xlu1 %1473 }
 0x266   : > { %v1478_v37 = vpop.permute.xlu1 %1477  ;;  %v1476_v38 = vpop.permute.xlu0 %1475 }
 0x267   : > { %v1481_v40 = vsel %vm433_vm0, %v1474_v36, %v1478_v37  ;;  %v1483_v42 = vsel %vm433_vm0, %v1478_v37, %v1474_v36  ;;  %v1472_v37 = vld [vmem:[#allocation5 + $0x8] sm:$0xff] }
 0x268   : > { %v1485_v46 = vmul.f32 %v1483_v42, %v3284_v16  ;;  %v1486_v4 = vmul.f32 %v1481_v40, %v3287_v17 }
 0x26a   : > { %v1456_v43 = vpop.permute.xlu1 %1455  ;;  %v1480_v0 = vpop.permute.xlu0 %1479 }
 0x26b   : > { %v1482_v3 = vsel %vm433_vm0, %v1476_v38, %v1480_v0  ;;  %v1484_v45 = vsel %vm433_vm0, %v1480_v0, %v1476_v38 }
 0x26c   : > { %v1487_v1 = vmul.f32 %v1484_v45, %v3284_v16  ;;  %v1488_v48 = vmul.f32 %v1482_v3, %v3287_v17 }
 0x26e   : > { %v1460_v49 = vpop.permute.xlu1 %1459  ;;  %v1458_v50 = vpop.permute.xlu0 %1457  ;;  %v2676_v12 = vpack.c.bf16 %v1488_v48, %v1486_v4  ;;  %v2678_v51 = vpack.c.bf16 %v1487_v1, %v1485_v46 }
 0x26f   : > { %v1463_v54 = vsel %vm402_vm1, %v1456_v43, %v1460_v49  ;;  %v1465_v55 = vsel %vm402_vm1, %v1460_v49, %v1456_v43 }
 0x270   : > { %2677 = vmatprep.subr.bf16.mxu1 %v2676_v12  ;;  %v1467_v61 = vmul.f32 %v1465_v55, %v3306_v33  ;;  %v1468_v62 = vmul.f32 %v1463_v54, %v3309_v34  ;;  %v1676_v12 = vld [vmem:[#allocation5 + $0x28] sm:$0xff] }
 0x271   : > { %2679 = vmatpush1.bf16.msra.mxu1 %v2678_v51 }
 0x272   : > { %v1659_v58 = vpop.permute.xlu1 %1658  ;;  %v1462_v60 = vpop.permute.xlu0 %1461 }
 0x273   : > { %v1464_v16 = vsel %vm402_vm1, %v1458_v50, %v1462_v60  ;;  %v1466_v17 = vsel %vm402_vm1, %v1462_v60, %v1458_v50 }
 0x274   : > { %v1469_v63 = vmul.f32 %v1466_v17, %v3306_v33  ;;  %v1470_v5 = vmul.f32 %v1464_v16, %v3309_v34  ;;  %2615 = vmatmul.mubr.msk.f32.vlgmr.msra.gmra.mrb[0].mxu1 %vm458_vm2, %v1490_v57  ;;  %v1471_v34 = vld [vmem:[#allocation5] sm:$0xff] }
 0x275   : > { %1568 = vmatprep.mubr.f32.mxu1 %v2995_v2 }
 0x276   : > { %v2682_v7 = vpack.c.bf16 %v1469_v63, %v1467_v61  ;;  %v1663_v8 = vpop.permute.xlu1 %1662  ;;  %v1661_v9 = vpop.permute.xlu0 %1660  ;;  %v2680_v13 = vpack.c.bf16 %v1470_v5, %v1468_v62 }
 0x277   : > { %v1666_v14 = vsel %vm633_vm3, %v1659_v58, %v1663_v8  ;;  %v1668_v33 = vsel %vm633_vm3, %v1663_v8, %v1659_v58 }
 0x278   : > { %2616 = vmatmul.mubr.msk.f32.gmra.mrb[2].mxu1 %vm458_vm2, %v1491_v6  ;;  %2681 = vmatprep.subr.bf16.mxu1 %v2680_v13  ;;  %v1670_v25 = vmul.f32 %v1668_v33, %v3331_v52  ;;  %v1671_v32 = vmul.f32 %v1666_v14, %v3334_v53 }
 0x279   : > { %2683 = vmatpush1.bf16.msra.mxu1 %v2682_v7  ;;  %1645 = vmatprep.mubr.f32.mxu1 %v2995_v2 }
 0x27a   : > { %v1765_v20 = vpop.permute.xlu1 %1764  ;;  %v1665_v21 = vpop.permute.xlu0 %1664 }
 0x27b   : > { %v1667_v22 = vsel %vm633_vm3, %v1661_v9, %v1665_v21  ;;  %v1669_v24 = vsel %vm633_vm3, %v1665_v21, %v1661_v9 }
 0x27c   : > { %v1672_v35 = vmul.f32 %v1669_v24, %v3331_v52  ;;  %v1673_v36 = vmul.f32 %v1667_v22, %v3334_v53  ;;  %2617 = vmatmul.mubr.msk.f32.vlgmr.msra.gmra.mrb[0].mxu1 %vm458_vm2, %v1471_v34  ;;  %v1675_v53 = vld [vmem:[#allocation5 + $0x20] sm:$0xff] }
 0x27d   : > { %1651 = vmatprep.mubr.f32.mxu1 %v2995_v2 }
 0x27e   : > { %v2686_v38 = vpack.c.bf16 %v1672_v35, %v1670_v25  ;;  %v1769_v40 = vpop.permute.xlu1 %1768  ;;  %v1767_v42 = vpop.permute.xlu0 %1766  ;;  %v2684_v43 = vpack.c.bf16 %v1673_v36, %v1671_v32  ;;  %v1977_v32 = vld [vmem:[#allocation5 + $0x50] sm:$0xff] }
 0x27f   : > { %v1772_v0 = vsel %vm753_vm4, %v1765_v20, %v1769_v40  ;;  %v1774_v52 = vsel %vm753_vm4, %v1769_v40, %v1765_v20 }
 0x280   : > { %2618 = vmatmul.mubr.msk.f32.gmra.mrb[2].mxu1 %vm458_vm2, %v1472_v37  ;;  %2685 = vmatprep.subr.bf16.mxu1 %v2684_v43  ;;  %v1776_v4 = vmul.f32 %v1774_v52, %v3357_v15  ;;  %v1777_v48 = vmul.f32 %v1772_v0, %v3360_v18 }
 0x281   : > { %2687 = vmatpush1.bf16.msra.mxu1 %v2686_v38  ;;  %1747 = vmatprep.mubr.f32.mxu1 %v2995_v2 }
 0x282   : > { %v1961_v3 = vpop.permute.xlu1 %1960  ;;  %v1771_v45 = vpop.permute.xlu0 %1770 }
 0x283   : > { %v1773_v46 = vsel %vm753_vm4, %v1767_v42, %v1771_v45  ;;  %v1775_v1 = vsel %vm753_vm4, %v1771_v45, %v1767_v42 }
 0x284   : > { %v1778_v49 = vmul.f32 %v1775_v1, %v3357_v15  ;;  %v1779_v50 = vmul.f32 %v1773_v46, %v3360_v18  ;;  %2619 = vmatmul.mubr.msk.f32.vlgmr.msra.gmra.mrb[0].mxu1 %vm458_vm2, %v1675_v53  ;;  %v1781_v15 = vld [vmem:[#allocation5 + $0x30] sm:$0xff]  ;;  %v2083_v1 = vld [vmem:[#allocation5 + $0x60] sm:$0xff] }
 0x285   : > { %1753 = vmatprep.mubr.f32.mxu1 %v2995_v2 }
 0x286   : > { %v2690_v51 = vpack.c.bf16 %v1778_v49, %v1776_v4  ;;  %v1965_v54 = vpop.permute.xlu1 %1964  ;;  %v1963_v55 = vpop.permute.xlu0 %1962  ;;  %v2688_v57 = vpack.c.bf16 %v1779_v50, %v1777_v48 }
 0x287   : > { %v1970_v58 = vsel %vm963_vm5, %v1965_v54, %v1961_v3  ;;  %v1968_v29 = vsel %vm963_vm5, %v1961_v3, %v1965_v54 }
 0x288   : > { %2620 = vmatmul.mubr.msk.f32.gmra.mrb[2].mxu1 %vm458_vm2, %v1676_v12  ;;  %2689 = vmatprep.subr.bf16.mxu1 %v2688_v57  ;;  %v1973_v17 = vmul.f32 %v1970_v58, %v3385_v39 }
 0x289   : > { %2691 = vmatpush1.bf16.msra.mxu1 %v2690_v51  ;;  %1853 = vmatprep.mubr.f32.mxu1 %v2995_v2 }
 0x28a   : > { %v2067_v18 = vpop.permute.xlu1 %2066  ;;  %v1967_v60 = vpop.permute.xlu0 %1966  ;;  %2693 = vmatprep.subr.bf16.mxu1 %v2692_v31 }
 0x28b   : > { %v1971_v16 = vsel %vm963_vm5, %v1967_v60, %v1963_v55  ;;  %v1969_v61 = vsel %vm963_vm5, %v1963_v55, %v1967_v60 }
 0x28c   : > { %v1975_v62 = vmul.f32 %v1971_v16, %v3385_v39  ;;  %2621 = vmatmul.mubr.msk.f32.vlgmr.msra.gmra.mrb[0].mxu1 %vm458_vm2, %v1781_v15  ;;  %v1974_v6 = vmul.f32 %v1969_v61, %v3389_v41  ;;  %v1972_v39 = vmul.f32 %v1968_v29, %v3389_v41  ;;  %v1872_v41 = vld [vmem:[#allocation5 + $0x48] sm:$0xff] }
 0x28d   : > { %2695 = vmatpush1.bf16.msra.mxu1 %v2694_v30  ;;  %1859 = vmatprep.mubr.f32.mxu1 %v2995_v2 }
 0x28e   : > { %v2071_v31 = vpop.permute.xlu1 %2070  ;;  %v2069_v63 = vpop.permute.xlu0 %2068  ;;  %v2696_v5 = vpack.c.bf16 %v1975_v62, %v1973_v17  ;;  %v2698_v8 = vpack.c.bf16 %v1974_v6, %v1972_v39 }
 0x28f   : > { %v2076_v19 = vsel %vm1083_vm6, %v2071_v31, %v2067_v18  ;;  %v2074_v34 = vsel %vm1083_vm6, %v2067_v18, %v2071_v31  ;;  %v2190_v18 = vld [vmem:[#allocation5 + $0x78] sm:$0xff] }
 0x290   : > { %2622 = vmatmul.mubr.msk.f32.gmra.mrb[2].mxu1 %vm458_vm2, %v1782_v27  ;;  %2697 = vmatprep.subr.bf16.mxu1 %v2696_v5  ;;  %v2079_v13 = vmul.f32 %v2076_v19, %v3413_v56  ;;  %v2078_v25 = vmul.f32 %v2074_v34, %v3417_v59 }
 0x291   : > { %1943 = vmatprep.mubr.f32.mxu1 %v2995_v2 }
 0x292   : > { %v2173_v30 = vpop.permute.xlu1 %2172  ;;  %v2073_v7 = vpop.permute.xlu0 %2072 }
 0x293   : > { %v2077_v9 = vsel %vm1083_vm6, %v2073_v7, %v2069_v63  ;;  %v2075_v14 = vsel %vm1083_vm6, %v2069_v63, %v2073_v7 }
 0x294   : > { %v2081_v33 = vmul.f32 %v2077_v9, %v3413_v56  ;;  %2623 = vmatmul.mubr.msk.f32.vlgmr.msra.gmra.mrb[0].mxu1 %vm458_vm2, %v1871_v28  ;;  %v2080_v24 = vmul.f32 %v2075_v14, %v3417_v59  ;;  %v1978_v59 = vld [vmem:[#allocation5 + $0x58] sm:$0xff]  ;;  %v2412_v9 = vld [vmem:[%s3820_s6] sm:$0xff] }
 0x295   : > { %2699 = vmatpush1.bf16.msra.mxu1 %v2698_v8  ;;  %1949 = vmatprep.mubr.f32.mxu1 %v2995_v2 }
 0x296   : > { %v2177_v20 = vpop.permute.xlu1 %2176  ;;  %v2175_v21 = vpop.permute.xlu0 %2174  ;;  %v2700_v22 = vpack.c.bf16 %v2081_v33, %v2079_v13  ;;  %v2702_v37 = vpack.c.bf16 %v2080_v24, %v2078_v25  ;;  %v2413_v13 = vld [vmem:[%s3820_s6 + $0x8] sm:$0xff] }
 0x297   : > { %v2182_v56 = vsel %vm1203_vm7, %v2177_v20, %v2173_v30  ;;  %v2180_v0 = vsel %vm1203_vm7, %v2173_v30, %v2177_v20 }
 0x298   : > { %2624 = vmatmul.mubr.msk.f32.gmra.mrb[2].mxu1 %vm458_vm2, %v1872_v41  ;;  %2701 = vmatprep.subr.bf16.mxu1 %v2700_v22  ;;  %v2185_v40 = vmul.f32 %v2182_v56, %v3439_v23  ;;  %v2184_v46 = vmul.f32 %v2180_v0, %v3443_v26 }
 0x299   : > { %2049 = vmatprep.mubr.f32.mxu1 %v2995_v2 }
 0x29a   : > { %v2279_v35 = vpop.permute.xlu1 %2278  ;;  %v2179_v36 = vpop.permute.xlu0 %2178 }
 0x29b   : > { %v2183_v38 = vsel %vm1203_vm7, %v2179_v36, %v2175_v21  ;;  %v2181_v42 = vsel %vm1203_vm7, %v2175_v21, %v2179_v36  ;;  %v2426_v36 = vld [vmem:[%s3821_s7] sm:$0x1] }
 0x29c   : > { %v2187_v43 = vmul.f32 %v2183_v38, %v3439_v23  ;;  %2625 = vmatmul.mubr.msk.f32.vlgmr.msra.gmra.mrb[0].mxu1 %vm458_vm2, %v1977_v32  ;;  %v2186_v45 = vmul.f32 %v2181_v42, %v3443_v26  ;;  %v2084_v26 = vld [vmem:[#allocation5 + $0x68] sm:$0xff]  ;;  %v2430_v42 = vld [vmem:[%s3822_s8 + $0x8] sm:$0xff] }
 0x29d   : > { %2703 = vmatpush1.bf16.msra.mxu1 %v2702_v37  ;;  %2055 = vmatprep.mubr.f32.mxu1 %v2995_v2 }
 0x29e   : > { %v2283_v52 = vpop.permute.xlu1 %2282  ;;  %v2281_v53 = vpop.permute.xlu0 %2280  ;;  %v2704_v3 = vpack.c.bf16 %v2187_v43, %v2185_v40  ;;  %v2706_v48 = vpack.c.bf16 %v2186_v45, %v2184_v46  ;;  %v2429_v43 = vld [vmem:[%s3822_s8] sm:$0xff]  ;;  %v2444_v45 = vld [vmem:[%s3823_s9 + $0x8] sm:$0xff] }
 0x29f   : > { %v2288_v23 = vsel %vm1323_vm8, %v2283_v52, %v2279_v35  ;;  %v2286_v54 = vsel %vm1323_vm8, %v2279_v35, %v2283_v52  ;;  %v2443_v46 = vld [vmem:[%s3823_s9] sm:$0xff] }
 0x2a0   : > { %2626 = vmatmul.mubr.msk.f32.gmra.mrb[2].mxu1 %vm458_vm2, %v1978_v59  ;;  %2705 = vmatprep.subr.bf16.mxu1 %v2704_v3  ;;  %v2291_v50 = vmul.f32 %v2288_v23, %v3465_v44  ;;  %v2290_v58 = vmul.f32 %v2286_v54, %v3469_v47 }
 0x2a1   : > { %2155 = vmatprep.mubr.f32.mxu1 %v2995_v2 }
 0x2a2   : > { %v2285_v4 = vpop.permute.xlu0 %2284 }
 0x2a3   : > { %v2289_v49 = vsel %vm1323_vm8, %v2285_v4, %v2281_v53  ;;  %v2287_v12 = vsel %vm1323_vm8, %v2281_v53, %v2285_v4 }
 0x2a4   : > { %v2293_v51 = vmul.f32 %v2289_v49, %v3465_v44  ;;  %2627 = vmatmul.mubr.msk.f32.vlgmr.msra.gmra.mrb[0].mxu1 %vm458_vm2, %v2083_v1  ;;  %v2292_v57 = vmul.f32 %v2287_v12, %v3469_v47  ;;  %v2189_v44 = vld [vmem:[#allocation5 + $0x70] sm:$0xff]  ;;  %v2296_v47 = vld [vmem:[#allocation5 + $0x88] sm:$0xff] }
 0x2a5   : > { %2707 = vmatpush1.bf16.msra.mxu1 %v2706_v48  ;;  %2161 = vmatprep.mubr.f32.mxu1 %v2995_v2 }
 0x2a6   : > { %v2708_v55 = vpack.c.bf16 %v2293_v51, %v2291_v50  ;;  %v2710_v15 = vpack.c.bf16 %v2292_v57, %v2290_v58 }
 0x2a8   : > { %2628 = vmatmul.mubr.msk.f32.gmra.mrb[2].mxu1 %vm458_vm2, %v2084_v26  ;;  %2709 = vmatprep.subr.bf16.mxu1 %v2708_v55 }
 0x2a9   : > { %2261 = vmatprep.mubr.f32.mxu1 %v2995_v2 }
 0x2ac   : > { %2629 = vmatmul.mubr.msk.f32.vlgmr.msra.gmra.mrb[0].mxu1 %vm458_vm2, %v2189_v44 }
 0x2ad   : > { %2711 = vmatpush1.bf16.msra.mxu1 %v2710_v15  ;;  %2267 = vmatprep.mubr.f32.mxu1 %v2995_v2 }
 0x2af   : > { %v2389_v60 = vpop.permute.xlu1 %2388 }
 0x2b0   : > { %2630 = vmatmul.mubr.msk.f32.gmra.mrb[2].mxu1 %vm458_vm2, %v2190_v18 }
 0x2b1   : > { %2367 = vmatprep.mubr.f32.mxu1 %v2995_v2 }
 0x2b3   : > { %v2394_v29 = vpop.permute.xlu0 %2393 }
 0x2b4   : > { %2631 = vmatmul.mubr.msk.f32.vlgmr.msra.gmra.mrb[0].mxu1 %vm458_vm2, %v2295_v10 }
 0x2b5   : > { %2373 = vmatprep.mubr.f32.mxu1 %v2995_v2 }
 0x2b8   : > { %2632 = vmatmul.mubr.msk.f32.gmra.mrb[2].mxu1 %vm458_vm2, %v2296_v47 }
 0x387   : > { %v2369_v16 = vpop.f32.mrb[0].mxu1 }
 0x388   : > { %v3713_v17 = vadd.f32 %v2389_v60, %v2369_v16  ;;  %v2371_v61 = vpop.f32.mrb[1].mxu1  ;;  %v2859_v16 = vld [vmem:[%s3187_s11 + $0x10] sm:$0xff] }
 0x389   : > { %v3715_v62 = vadd.f32 %v2389_v60, %v2371_v61 }
 0x38a   : > { %v2400_v27 = vmax.f32 %v3713_v17, 0.0 }
 0x38b   : > { %v2401_v31 = vmax.f32 %v3715_v62, 0.0  ;;  %v2375_v63 = vpop.f32.mrb[2].mxu1 }
 0x38c   : > { %v3719_v5 = vadd.f32 %v2394_v29, %v2375_v63  ;;  %v2377_v6 = vpop.f32.mrb[3].mxu1 }
 0x38d   : > { %v3721_v2 = vadd.f32 %v2394_v29, %v2377_v6  ;;  %v2404_v39 = vadd.f32 %v2401_v31, %v2400_v27  ;;  %v2860_v29 = vld [vmem:[%s3187_s11 + $0x18] sm:$0xff] }
 0x38e   : > { %v2402_v19 = vmax.f32 %v3719_v5, 0.0  ;;  %v2861_v5 = vld [vmem:[%s3187_s11] sm:$0xff] }
 0x38f   : > { %v2403_v28 = vmax.f32 %v3721_v2, 0.0  ;;  %2405 = vadd.xlane.f32.xlu1 %v2404_v39  ;;  %v2862_v2 = vld [vmem:[%s3187_s11 + $0x8] sm:$0xff]  ;;  %s2923_s11 = sshll.u32 %s3005_s18, 4  ;;  %s2924_s11 = int_to_ptr.vmem [resolvable:$false] %s2923_s11 }
 0x390   : > { %s2925_s20 = scalar_lea.vmem %s2924_s11, 1024  ;;  %p2926_p4 = scmp.lt.s32.totalorder %s3761_s28, %s2924_s11 }
 0x391   : > { %v2407_v30 = vadd.f32 %v2403_v28, %v2402_v19  ;;  %p2927_p7 = scmp.lt.s32.totalorder %s2925_s20, %s2919_s22 }
 0x393   : > { %2408 = vadd.xlane.f32.xlu0 %v2407_v30  ;;  %p2928_p8 = por %p2927_p7, %p2926_p4 }
 0x395   : > { %p2929_p11 = pnand %p2928_p8, %p2922_p3 }
 0x41c   : > { %v2406_v7 = vpop.xlane.xlu1 %2405 }
 0x41d   : > { %v2410_v8 = vmul.f32 0.00390625, %v2406_v7 }
 0x41f   : > { %v2414_v33 = vmul.f32 %v2412_v9, %v2410_v8 }
 0x420   : > { %v2409_v14 = vpop.xlane.xlu0 %2408 }
 0x421   : > { %v2411_v41 = vmul.f32 0.00390625, %v2409_v14  ;;  %v2417_v20 = vsel %vm2416_vm9, %v2414_v33, 0.0 }
 0x423   : > { %v2415_v34 = vmul.f32 %v2413_v13, %v2411_v41 }
 0x425   : > { %v2418_v21 = vsel %vm2416_vm9, %v2415_v34, 0.0 }
 0x426   : > { %v2419_v22 = vadd.f32 %v2418_v21, %v2417_v20 }
 0x428   : > { %v2420_v24 = vrot.slane %v2419_v22, 4 }
 0x42a   : > { %v2421_v25 = vadd.f32 %v2420_v24, %v2419_v22 }
 0x42c   : > { %v2422_v56 = vrot.slane %v2421_v25, 2 }
 0x42e   : > { %v2423_v32 = vadd.f32 %v2422_v56, %v2421_v25 }
 0x430   : > { %v2424_v35 = vrot.slane %v2423_v32, 1 }
 0x432   : > { %v2425_v37 = vadd.f32 %v2424_v35, %v2423_v32 }
 0x434   : > { %v2427_v38 = vadd.f32 %v2426_v36, %v2425_v37 }
 0x436   : > { %v2428_v40 = vmax.f32 %v2427_v38, 0.0 }
 0x438   : > { %v2434_v59 = vrot.slane %v2428_v40, %v3275_v11 }
 0x43a   : > { %v2436_v0 = vmul.f32 %v2434_v59, %v2430_v42  ;;  %v2435_v52 = vmul.f32 %v2434_v59, %v2429_v43 }
 0x43c   : > { %v2440_v53 = vsel %vm2416_vm9, %v2436_v0, 0.0  ;;  %v2437_v3 = vsel %vm2416_vm9, %v2435_v52, 0.0 }
 0x43d   : > { %2441 = vadd.xlane.f32.xlu1 %v2440_v53  ;;  %2438 = vadd.xlane.f32.xlu0 %v2437_v3 }
 0x4ca   : > { %v2442_v23 = vpop.xlane.xlu1 %2441  ;;  %v2439_v1 = vpop.xlane.xlu0 %2438 }
 0x4cb   : > { %v2446_v4 = vadd.f32 %v2444_v45, %v2442_v23  ;;  %v2445_v11 = vadd.f32 %v2443_v46, %v2439_v1 }
 0x4cd   : > { %v2448_v48 = vsub.f32 0.0, %v2446_v4  ;;  %v2447_v49 = vsub.f32 0.0, %v2445_v11 }
 0x4cf   : > { %v2451_v50 = vmul.f32 1.442695, %v2448_v48  ;;  %v2449_v12 = vmul.f32 1.442695, %v2447_v49 }
 0x4d1   : > { %2851 = vpow2.f32 %v2451_v50 }
 0x4d2   : > { %2853 = vpow2.f32 %v2449_v12 }
 0x4db   : > { %v2852_v51 = vpop.eup %2851 }
 0x4dc   : > { %v2854_v26 = vpop.eup %2853  ;;  %v2454_v54 = vadd.f32 1.0, %v2852_v51 }
 0x4dd   : > { %v2453_v55 = vadd.f32 1.0, %v2854_v26 }
 0x4de   : > { %2855 = vrcp.f32 %v2454_v54 }
 0x4df   : > { %2857 = vrcp.f32 %v2453_v55 }
 0x4e8   : > { %v2856_v57 = vpop.eup %2855 }
 0x4e9   : > { %v2858_v58 = vpop.eup %2857  ;;  %2466 = vperm.xlu1 %2850, %v2856_v57  }
 0x4ea   : > { %2461 = vperm.xlu0 %2849, %v2858_v58  }
 0x568   : > { %v2467_v44 = vpop.permute.xlu1 %2466 }
 0x569   : > { %v2471_v15 = vmul.f32 %v2467_v44, %v2402_v19  ;;  %v2472_v18 = vmul.f32 %v2467_v44, %v2403_v28  ;;  %v2462_v10 = vpop.permute.xlu0 %2461 }
 0x56a   : > { %v2469_v47 = vmul.f32 %v2462_v10, %v2400_v27  ;;  %v2470_v60 = vmul.f32 %v2462_v10, %v2401_v31 }
 0x56b   : > { %v2475_v61 = vadd.f32 %v2859_v16, %v2471_v15  ;;  %v2476_v63 = vadd.f32 %v2860_v29, %v2472_v18 }
 0x56c   : > { %v2473_v6 = vadd.f32 %v2861_v5, %v2469_v47  ;;  %v2474_v39 = vadd.f32 %v2862_v2, %v2470_v60 }
 0x56d   : > { %2479 = vst [vmem:[%s382_s24 + $0x10] sm:$0xff] %v2475_v61  ;;  %2480 = vst [vmem:[%s382_s24 + $0x18] sm:$0xff] %v2476_v63 }
 0x56e   : > { %2477 = vst [vmem:[%s382_s24] sm:$0xff] %v2473_v6  ;;  %2478 = vst [vmem:[%s382_s24 + $0x8] sm:$0xff] %v2474_v39 }
 0x56f   : > { %2932 = shalt.err (!%p2929_p11)
}
 0x570   : > { %s2933_s21 = scalar_lea.hbm %s3770_s15, 512  ;;  %s2937_s27 = scalar_lea.hbm %s3824_s10, 1024 }
 0x571   : > { %p2934_p13 = scmp.ne.s32.totalorder %s3770_s15, %s2933_s21  ;;  %p2938_p6 = scmp.lt.u32.totalorder %s3770_s15, %s3824_s10 }
 0x572   : > { %p2939_p9 = scmp.lt.u32.totalorder %s2937_s27, %s2933_s21  ;;  %p2941_p12 = scmp.lt.u32.totalorder %s2933_s21, %s3770_s15 }
 0x573   : > { %p2935_p5 = pnand %p2934_p13, %p3845_p1 }
 0x574   : > { %p2940_p10 = por %p2939_p9, %p2938_p6 }
 0x575   : > { %p2936_p0 = pneg %p2935_p5 }
 0x576   : > { %p2942_p2 = por %p2941_p12, %p2940_p10 }
 0x578   : > { %p2943_p3 = pnand %p2942_p2, %p2936_p0 }
 0x57a   : > { %2946 = shalt.err (!%p2943_p3)
}
 0x57b   : > { %s3006_s17 = smov 256  }
 0x57c   : > { %2784 = dma.vmem_to_hbm [thread:$0]  (%p3845_p1), %s3761_s28, 512, %s3770_s15, %s3772_s19, %s3006_s17, %s3006_s17, %s2996_s12  }
 0x57d PF: > { %s3846_s25 = sld [smem:[#allocation14_spill]]  ;;  %p2801_p4 = scmp.ge.s32.totalorder %s2989_s16, 2 }
 0x57e   : > { %s2510_s22 = sand.u32 1, %s2977_s13  }
 0x57f   : > { %s2511_s18 = scalar_lea.sflag [#allocation4], %s2510_s22 }
 0x583   : > { %p3847_p7 = scmp.ne.s32.totalorder %s3846_s25, 0 }
 0x585   : > { %p2794_p8 = pnand %p2801_p4, %p3847_p7 }
 0x587   : > { %2972 = dma.done.wait (!%p2794_p8), %s2511_s18, 512  }
 0x588   : > { %2974 = vsyncadd (!%p2794_p8), %s2511_s18, 4294966784  ;;  %s3848_s16 = sld [smem:[#allocation12_spill]]  ;;  %s3849_s11 = sld [smem:[#allocation11_spill]] }
 0x589   : > { %s3850_s15 = sld [smem:[#allocation13_spill]]  ;;  %s3851_s13 = smov %s2981_s14 }
 0x58e   : > { %p22_p11 = scmp.ge.s32.totalorder %s3848_s16, 4   ;;  %s3852_s14 = smov %s3849_s11 }
 0x590   :  { %24 = sbr.rel (!%p22_p11) target bundleno = 5 (0x5), region = 127 }
 0x597   :  { %2516 = vsyncpa [#allocation3], 1 }
 0x598   :  { %2518 = vsyncpa [#allocation3 + $0x1], 1 }
 0x599   :  { %2519 = vsyncpa [#allocation6], 1 }
 0x59a   :  { %2520 = vsyncpa [#allocation4], 1 }
 0x59b   :  { %2522 = vsyncpa [#allocation4 + $0x1], 1 }

</bundles_post_ra>
